<compile_context>
chip_gen: v5e
topology: v5e:2x2
jax: 0.10.0
libtpu: 0.0.40
codegen_flags: <defaults>
</compile_context>

<pallas_src>
import functools

import jax
import jax.numpy as jnp
from jax.experimental import pallas as pl
from jax.experimental.pallas import tpu as pltpu

LANE = 128


# ----------------------------- small helpers ---------------------------------

def _round_up(x, m):
    return (x + m - 1) // m * m


def _pad_to(a, *target):
    pads = [(0, t - s) for s, t in zip(a.shape, target)]
    return jnp.pad(a, pads)


def _silu(x):
    return x * jax.nn.sigmoid(x)          # sigmoid -> EUP, epilogue stays f32


def _leaky_relu(x, slope=0.01):
    return jnp.where(x >= 0, x, slope * x)


def _dot(x, w_ref):
    # bf16 (or f32) MXU operands, always f32 accumulation.
    return jnp.dot(x.astype(w_ref.dtype), w_ref[...], preferred_element_type=jnp.float32)


# ----------------------------- Pallas kernels --------------------------------

def mp_kernel(src_ref, dst_ref, edge_ref,
              # edge-update MLP (layer 1 weight split into src / dst / edge parts)
              ew1s_ref, ew1d_ref, ew1e_ref, eb1_ref,
              ew2_ref, eb2_ref, ew3_ref, eb3_ref, ew4_ref, eb4_ref,
              ew5_ref, eb5_ref, ew6_ref, eb6_ref,
              # node-update MLP (layer 1 weight split into node / edge parts)
              nw1n_ref, nw1e_ref, nb1_ref, nw2_ref, nb2_ref,
              edge_out_ref, msg_out_ref):
    src = src_ref[...]
    dst = dst_ref[...]
    edge = edge_ref[...]

    # edge_update MLP: Linear-SiLU x3, Linear-LeakyReLU, Linear-SiLU, Linear  (+ residual)
    h = _silu(_dot(src, ew1s_ref) + _dot(dst, ew1d_ref) + _dot(edge, ew1e_ref) + eb1_ref[...])
    h = _silu(_dot(h, ew2_ref) + eb2_ref[...])
    h = _silu(_dot(h, ew3_ref) + eb3_ref[...])
    h = _leaky_relu(_dot(h, ew4_ref) + eb4_ref[...])
    h = _silu(_dot(h, ew5_ref) + eb5_ref[...])
    edge_upd = _dot(h, ew6_ref) + eb6_ref[...] + edge.astype(jnp.float32)
    edge_out_ref[...] = edge_upd

    # node_update MLP on per-edge message = [node[dst], edge_upd]; aggregation happens outside.
    m = _silu(_dot(dst, nw1n_ref) + _dot(edge_upd, nw1e_ref) + nb1_ref[...])
    msg_out_ref[...] = _dot(m, nw2_ref) + nb2_ref[...]


def head_kernel(grp_ref, src_ref, dst_ref, edge_ref,
                w1s_ref, w1d_ref, w1e_ref, b1_ref,
                w2_ref, b2_ref, w3_ref, b3_ref, w4_ref, b4_ref,
                w5_ref, b5_ref, out_ref):
    # grp_ref (scalar-prefetch) is only consumed by the index_maps that pick this tile's head.
    del grp_ref
    h = _silu(_dot(src_ref[...], w1s_ref) + _dot(dst_ref[...], w1d_ref)
              + _dot(edge_ref[...], w1e_ref) + b1_ref[...])
    h = _silu(_dot(h, w2_ref) + b2_ref[...])
    h = _silu(_dot(h, w3_ref) + b3_ref[...])
    h = _leaky_relu(_dot(h, w4_ref) + b4_ref[...])
    out_ref[...] = _dot(h, w5_ref) + b5_ref[...]


# ----------------------------- parameters ------------------------------------

def _linear_params(key, fan_in, fan_out):
    kw, kb = jax.random.split(key)
    bound = float(fan_in) ** -0.5
    W = jax.random.uniform(kw, (fan_in, fan_out), jnp.float32, -bound, bound)
    b = jax.random.uniform(kb, (1, fan_out), jnp.float32, -bound, bound)
    return W, b


def init_params(key, node_dim, edge_dim, hidden_mp, hidden_head, n_types, n_orb):
    edge_dims = [2 * node_dim + edge_dim, hidden_mp, hidden_mp, hidden_mp // 2,
                 hidden_mp, hidden_mp, edge_dim]
    node_dims = [node_dim + edge_dim, hidden_mp, node_dim]
    head_dims = [2 * node_dim + edge_dim, hidden_head, hidden_head, hidden_head,
                 hidden_head, n_orb * n_orb]
    P = n_types * n_types
    n_keys = (len(edge_dims) - 1) + (len(node_dims) - 1) + P * (len(head_dims) - 1)
    keys = iter(jax.random.split(key, n_keys))

    params = {'edge': [], 'node': [], 'head_W': [], 'head_b': []}
    for i in range(len(edge_dims) - 1):
        params['edge'].append(_linear_params(next(keys), edge_dims[i], edge_dims[i + 1]))
    for i in range(len(node_dims) - 1):
        params['node'].append(_linear_params(next(keys), node_dims[i], node_dims[i + 1]))
    for l in range(len(head_dims) - 1):
        Ws, bs = [], []
        for _p in range(P):
            W, b = _linear_params(next(keys), head_dims[l], head_dims[l + 1])
            Ws.append(W)
            bs.append(b)
        params['head_W'].append(jnp.stack(Ws, 0))   # [P, in, out]
        params['head_b'].append(jnp.stack(bs, 0))   # [P, 1, out]
    return params


# ----------------------------- wrapper (glue) ---------------------------------

def edge_extraction_forward(params, node_features, edge_radial, edge_angular,
                            edge_index, node_atom_types, *, n_types, n_orb,
                            n_layers=1, mxu_dtype=jnp.bfloat16):
    # The torch module loops n_layers times but always re-reads the ORIGINAL inputs, so one
    # message-passing pass is exactly equivalent; we run a single pass.
    del n_layers
    f32 = jnp.float32
    Nn, node_dim = node_features.shape
    E = edge_index.shape[1]
    Dc = edge_radial.shape[1] + edge_angular.shape[1]
    P = n_types * n_types
    n_out = n_orb * n_orb

    N_p = _round_up(node_dim, LANE)
    Dc_p = _round_up(Dc, LANE)
    OUT_p = _round_up(n_out, LANE)

    src, dst = edge_index[0], edge_index[1]

    # ---------------- real gathers + lane padding (no one-hot matmuls) ----------------
    node_p = _pad_to(node_features.astype(f32), Nn, N_p)
    edge_feat = jnp.concatenate([edge_radial, edge_angular], axis=-1).astype(f32)

    tile_mp = min(512, _round_up(E, 8))
    E_pad = _round_up(E, tile_mp)
    src_f = _pad_to(node_p[src], E_pad, N_p).astype(mxu_dtype)
    dst_f = _pad_to(node_p[dst], E_pad, N_p).astype(mxu_dtype)
    edge_f = _pad_to(edge_feat, E_pad, Dc_p).astype(mxu_dtype)

    def pw(w, r, c):                      # pad + cast weight (MXU operand)
        return _pad_to(w, r, c).astype(mxu_dtype)

    def pb(b, c):                         # pad bias (stays f32, added to f32 accumulator)
        return _pad_to(b, 1, c).astype(f32)

    # edge-update MLP weights (first layer split: [src | dst | edge] rows)
    eW1, eb1 = params['edge'][0]
    H0_p = _round_up(eW1.shape[1], LANE)
    mp_params = [pw(eW1[:node_dim], N_p, H0_p),
                 pw(eW1[node_dim:2 * node_dim], N_p, H0_p),
                 pw(eW1[2 * node_dim:], Dc_p, H0_p),
                 pb(eb1, H0_p)]
    in_p = H0_p
    for W, b in params['edge'][1:]:
        out_p = _round_up(W.shape[1], LANE)
        mp_params += [pw(W, in_p, out_p), pb(b, out_p)]
        in_p = out_p

    # node-update MLP weights (first layer split: [node | edge] rows)
    nW1, nb1 = params['node'][0]
    Hn_p = _round_up(nW1.shape[1], LANE)
    mp_params += [pw(nW1[:node_dim], N_p, Hn_p),
                  pw(nW1[node_dim:], Dc_p, Hn_p),
                  pb(nb1, Hn_p)]
    nW2, nb2 = params['node'][1]
    mp_params += [pw(nW2, Hn_p, N_p), pb(nb2, N_p)]

    # ---------------- message-passing kernel: grid over edge tiles ----------------
    mp_row_specs = [
        pl.BlockSpec((tile_mp, N_p), lambda t: (t, 0)),
        pl.BlockSpec((tile_mp, N_p), lambda t: (t, 0)),
        pl.BlockSpec((tile_mp, Dc_p), lambda t: (t, 0)),
    ]
    mp_w_specs = [pl.BlockSpec(w.shape, lambda t: (0, 0)) for w in mp_params]

    edge_upd_pad, msg_pad = pl.pallas_call(
        mp_kernel,
        grid=(E_pad // tile_mp,),
        in_specs=mp_row_specs + mp_w_specs,
        out_specs=(pl.BlockSpec((tile_mp, Dc_p), lambda t: (t, 0)),
                   pl.BlockSpec((tile_mp, N_p), lambda t: (t, 0))),
        out_shape=(jax.ShapeDtypeStruct((E_pad, Dc_p), f32),
                   jax.ShapeDtypeStruct((E_pad, N_p), f32)),
        compiler_params=pltpu.CompilerParams(dimension_semantics=("parallel",)),
    )(src_f, dst_f, edge_f, *mp_params)

    # scatter-add + degree normalisation + residual (cheap, done in XLA)
    msg = msg_pad[:E, :node_dim]
    agg = jax.ops.segment_sum(msg, dst, num_segments=Nn)
    deg = jax.ops.segment_sum(jnp.ones((E,), f32), dst, num_segments=Nn)
    deg = jnp.maximum(deg, 1.0)
    node_upd = agg / deg[:, None] + node_features.astype(f32)
    node_upd_p = _pad_to(node_upd, Nn, N_p)

    # ---------------- extraction heads: MoE-style grouping by pair type ----------------
    pair_id = (node_atom_types[src] * n_types + node_atom_types[dst]).astype(jnp.int32)
    tile_h = min(256, _round_up(max(E // P, 1), 8))
    E_buf = _round_up(E + P * (tile_h - 1), tile_h)          # static upper bound on padded size
    n_tiles_h = E_buf // tile_h

    order = jnp.argsort(pair_id).astype(jnp.int32)           # edges sorted by pair type
    sorted_pair = pair_id[order]
    counts = jnp.zeros((P,), jnp.int32).at[pair_id].add(1)
    padded_counts = ((counts + tile_h - 1) // tile_h) * tile_h
    group_starts = jnp.concatenate([jnp.zeros((1,), jnp.int32),
                                    jnp.cumsum(padded_counts)[:-1].astype(jnp.int32)])
    sorted_starts = jnp.concatenate([jnp.zeros((1,), jnp.int32),
                                     jnp.cumsum(counts)[:-1].astype(jnp.int32)])
    rank = jnp.arange(E, dtype=jnp.int32) - sorted_starts[sorted_pair]
    dest_pos = group_starts[sorted_pair] + rank              # buffer slot of each sorted edge

    buf_to_edge = jnp.zeros((E_buf,), jnp.int32).at[dest_pos].set(order)

    group_ends = jnp.cumsum(padded_counts)
    tile_starts = jnp.arange(n_tiles_h, dtype=jnp.int32) * tile_h
    tile_group = jnp.clip(jnp.searchsorted(group_ends, tile_starts, side='right'),
                          0, P - 1).astype(jnp.int32)        # one head id per edge tile

    src_b = node_upd_p[src[buf_to_edge]].astype(mxu_dtype)
    dst_b = node_upd_p[dst[buf_to_edge]].astype(mxu_dtype)
    edge_b = edge_upd_pad[buf_to_edge].astype(mxu_dtype)

    def pw3(w, r, c):
        return _pad_to(w, P, r, c).astype(mxu_dtype)

    def pb3(b, c):
        return _pad_to(b, P, 1, c).astype(f32)

    hW1, hb1 = params['head_W'][0], params['head_b'][0]
    Hh0_p = _round_up(hW1.shape[2], LANE)
    head_params = [pw3(hW1[:, :node_dim], N_p, Hh0_p),
                   pw3(hW1[:, node_dim:2 * node_dim], N_p, Hh0_p),
                   pw3(hW1[:, 2 * node_dim:], Dc_p, Hh0_p),
                   pb3(hb1, Hh0_p)]
    in_p = Hh0_p
    for li in range(1, 5):
        W, b = params['head_W'][li], params['head_b'][li]
        out_p = _round_up(W.shape[2], LANE)
        head_params += [pw3(W, in_p, out_p), pb3(b, out_p)]
        in_p = out_p

    head_row_specs = [
        pl.BlockSpec((tile_h, N_p), lambda t, g: (t, 0)),
        pl.BlockSpec((tile_h, N_p), lambda t, g: (t, 0)),
        pl.BlockSpec((tile_h, Dc_p), lambda t, g: (t, 0)),
    ]
    head_w_specs = [pl.BlockSpec((None,) + w.shape[1:], lambda t, g: (g[t], 0, 0))
                    for w in head_params]

    grid_spec = pltpu.PrefetchScalarGridSpec(
        num_scalar_prefetch=1,
        grid=(n_tiles_h,),
        in_specs=head_row_specs + head_w_specs,
        out_specs=pl.BlockSpec((tile_h, OUT_p), lambda t, g: (t, 0)),
    )
    out_buf = pl.pallas_call(
        head_kernel,
        grid_spec=grid_spec,
        out_shape=jax.ShapeDtypeStruct((E_buf, OUT_p), f32),
        compiler_params=pltpu.CompilerParams(dimension_semantics=("parallel",)),
    )(tile_group, src_b, dst_b, edge_b, *head_params)

    out_sorted = out_buf[dest_pos][:, :n_out]                # per sorted edge
    hop = jnp.zeros((E, n_out), f32).at[order].set(out_sorted)
    return hop.reshape(E, n_orb, n_orb)


# ----------------------------- pure-JAX reference ------------------------------

def _mm(a, b):
    return jnp.dot(a, b, precision=jax.lax.Precision.HIGHEST)


def _act(x, name):
    if name == 'silu':
        return x * jax.nn.sigmoid(x)
    if name == 'leaky':
        return jnp.where(x >= 0, x, 0.01 * x)
    return x


def reference_forward(params, node_features, edge_radial, edge_angular,
                      edge_index, node_atom_types, n_types, n_orb):
    src, dst = edge_index[0], edge_index[1]
    Nn = node_features.shape[0]
    E = edge_index.shape[1]
    edge_feat = jnp.concatenate([edge_radial, edge_angular], -1)
    src_f = node_features[src]
    dst_f = node_features[dst]

    h = jnp.concatenate([src_f, dst_f, edge_feat], -1)
    for (W, b), a in zip(params['edge'], ('silu', 'silu', 'silu', 'leaky', 'silu', 'none')):
        h = _act(_mm(h, W) + b, a)
    edge_upd = h + edge_feat

    h = jnp.concatenate([dst_f, edge_upd], -1)
    for (W, b), a in zip(params['node'], ('silu', 'none')):
        h = _act(_mm(h, W) + b, a)
    agg = jax.ops.segment_sum(h, dst, num_segments=Nn)
    deg = jax.ops.segment_sum(jnp.ones((E,), jnp.float32), dst, num_segments=Nn)
    deg = jnp.maximum(deg, 1.0)
    node_upd = agg / deg[:, None] + node_features

    P = n_types * n_types
    pair_id = node_atom_types[src] * n_types + node_atom_types[dst]
    hx = jnp.concatenate([node_upd[src], node_upd[dst], edge_upd], -1)
    outs = []
    for p in range(P):
        h = hx
        for l, a in zip(range(5), ('silu', 'silu', 'silu', 'leaky', 'none')):
            h = _act(_mm(h, params['head_W'][l][p]) + params['head_b'][l][p], a)
        outs.append(h)
    outs = jnp.stack(outs, 0)                               # [P, E, n_orb*n_orb]
    sel = outs[pair_id, jnp.arange(E)]
    return sel.reshape(E, n_orb, n_orb)


# ----------------------------- main -------------------------------------------

if __name__ == "__main__":
    node_dim = 32           # descriptor_dim
    edge_radial_dim = 8
    edge_angular_dim = 9
    edge_dim = edge_radial_dim + edge_angular_dim
    hidden_mp = 64          # hidden_dim_message_passing
    hidden_head = 64        # hidden_dim_matrix_extraction
    n_types = 2             # atom types (uniform orbital count so outputs stack)
    n_orb = 4               # orbitals per atom type
    num_nodes = 8
    num_edges = 16

    key = jax.random.PRNGKey(0)
    kd = jax.random.split(key, 6)
    node_features = jax.random.normal(kd[0], (num_nodes, node_dim), jnp.float32)
    edge_radial = jax.random.normal(kd[1], (num_edges, edge_radial_dim), jnp.float32)
    edge_angular = jax.random.normal(kd[2], (num_edges, edge_angular_dim), jnp.float32)
    edge_index = jax.random.randint(kd[3], (2, num_edges), 0, num_nodes, jnp.int32)
    node_atom_types = jax.random.randint(kd[4], (num_nodes,), 0, n_types, jnp.int32)

    params = init_params(kd[5], node_dim, edge_dim, hidden_mp, hidden_head, n_types, n_orb)

    fwd = jax.jit(edge_extraction_forward,
                  static_argnames=("n_types", "n_orb", "n_layers", "mxu_dtype"))

    # f32 MXU path — validated against the pure-JAX reference.
    out_f32 = jax.block_until_ready(
        fwd(params, node_features, edge_radial, edge_angular, edge_index, node_atom_types,
            n_types=n_types, n_orb=n_orb, n_layers=1, mxu_dtype=jnp.float32))
    # bf16 MXU path — 2x MXU rate / half VMEM+HBM traffic on v6e/v7x, f32 accumulation.
    out_bf16 = jax.block_until_ready(
        fwd(params, node_features, edge_radial, edge_angular, edge_index, node_atom_types,
            n_types=n_types, n_orb=n_orb, n_layers=1, mxu_dtype=jnp.bfloat16))

    ref = reference_forward(params, node_features, edge_radial, edge_angular,
                            edge_index, node_atom_types, n_types, n_orb)

    assert out_f32.shape == (num_edges, n_orb, n_orb)
    assert out_bf16.shape == (num_edges, n_orb, n_orb)
    assert jnp.allclose(out_f32, ref, atol=2e-2, rtol=2e-2)
    assert jnp.all(jnp.isfinite(out_bf16))
    assert jnp.allclose(out_bf16, ref, atol=2e-1, rtol=2e-1)
    print("KERNEL_OK")
</pallas_src>

<mosaic_0001>
module attributes {stable_mosaic.version = 11 : i64} {
  func.func @mp_kernel(%arg0: i32, %arg1: memref<16x128xf32, #tpu.memory_space<vmem>>, %arg2: memref<16x128xf32, #tpu.memory_space<vmem>>, %arg3: memref<16x128xf32, #tpu.memory_space<vmem>>, %arg4: memref<128x128xf32, #tpu.memory_space<vmem>>, %arg5: memref<128x128xf32, #tpu.memory_space<vmem>>, %arg6: memref<128x128xf32, #tpu.memory_space<vmem>>, %arg7: memref<1x128xf32, #tpu.memory_space<vmem>>, %arg8: memref<128x128xf32, #tpu.memory_space<vmem>>, %arg9: memref<1x128xf32, #tpu.memory_space<vmem>>, %arg10: memref<128x128xf32, #tpu.memory_space<vmem>>, %arg11: memref<1x128xf32, #tpu.memory_space<vmem>>, %arg12: memref<128x128xf32, #tpu.memory_space<vmem>>, %arg13: memref<1x128xf32, #tpu.memory_space<vmem>>, %arg14: memref<128x128xf32, #tpu.memory_space<vmem>>, %arg15: memref<1x128xf32, #tpu.memory_space<vmem>>, %arg16: memref<128x128xf32, #tpu.memory_space<vmem>>, %arg17: memref<1x128xf32, #tpu.memory_space<vmem>>, %arg18: memref<128x128xf32, #tpu.memory_space<vmem>>, %arg19: memref<128x128xf32, #tpu.memory_space<vmem>>, %arg20: memref<1x128xf32, #tpu.memory_space<vmem>>, %arg21: memref<128x128xf32, #tpu.memory_space<vmem>>, %arg22: memref<1x128xf32, #tpu.memory_space<vmem>>, %arg23: memref<16x128xf32, #tpu.memory_space<vmem>>, %arg24: memref<16x128xf32, #tpu.memory_space<vmem>>) attributes {dimension_semantics = [#tpu.dimension_semantics<parallel>], iteration_bounds = array<i64: 1>, scalar_prefetch = 0 : i64, scratch_operands = 0 : i64, tpu.core_type = #tpu.core_type<tc>, window_params = [{transform_indices = @transform_0, window_bounds = array<i64: 16, 128>}, {transform_indices = @transform_1, window_bounds = array<i64: 16, 128>}, {transform_indices = @transform_2, window_bounds = array<i64: 16, 128>}, {pipeline_mode = #tpu.pipeline_mode<synchronous>, transform_indices = @transform_3, window_bounds = array<i64: 128, 128>}, {pipeline_mode = #tpu.pipeline_mode<synchronous>, transform_indices = @transform_4, window_bounds = array<i64: 128, 128>}, {pipeline_mode = #tpu.pipeline_mode<synchronous>, transform_indices = @transform_5, window_bounds = array<i64: 128, 128>}, {pipeline_mode = #tpu.pipeline_mode<synchronous>, transform_indices = @transform_6, window_bounds = array<i64: 1, 128>}, {pipeline_mode = #tpu.pipeline_mode<synchronous>, transform_indices = @transform_7, window_bounds = array<i64: 128, 128>}, {pipeline_mode = #tpu.pipeline_mode<synchronous>, transform_indices = @transform_8, window_bounds = array<i64: 1, 128>}, {pipeline_mode = #tpu.pipeline_mode<synchronous>, transform_indices = @transform_9, window_bounds = array<i64: 128, 128>}, {pipeline_mode = #tpu.pipeline_mode<synchronous>, transform_indices = @transform_10, window_bounds = array<i64: 1, 128>}, {pipeline_mode = #tpu.pipeline_mode<synchronous>, transform_indices = @transform_11, window_bounds = array<i64: 128, 128>}, {pipeline_mode = #tpu.pipeline_mode<synchronous>, transform_indices = @transform_12, window_bounds = array<i64: 1, 128>}, {pipeline_mode = #tpu.pipeline_mode<synchronous>, transform_indices = @transform_13, window_bounds = array<i64: 128, 128>}, {pipeline_mode = #tpu.pipeline_mode<synchronous>, transform_indices = @transform_14, window_bounds = array<i64: 1, 128>}, {pipeline_mode = #tpu.pipeline_mode<synchronous>, transform_indices = @transform_15, window_bounds = array<i64: 128, 128>}, {pipeline_mode = #tpu.pipeline_mode<synchronous>, transform_indices = @transform_16, window_bounds = array<i64: 1, 128>}, {pipeline_mode = #tpu.pipeline_mode<synchronous>, transform_indices = @transform_17, window_bounds = array<i64: 128, 128>}, {pipeline_mode = #tpu.pipeline_mode<synchronous>, transform_indices = @transform_18, window_bounds = array<i64: 128, 128>}, {pipeline_mode = #tpu.pipeline_mode<synchronous>, transform_indices = @transform_19, window_bounds = array<i64: 1, 128>}, {pipeline_mode = #tpu.pipeline_mode<synchronous>, transform_indices = @transform_20, window_bounds = array<i64: 128, 128>}, {pipeline_mode = #tpu.pipeline_mode<synchronous>, transform_indices = @transform_21, window_bounds = array<i64: 1, 128>}, {transform_indices = @transform_22, window_bounds = array<i64: 16, 128>}, {transform_indices = @transform_23, window_bounds = array<i64: 16, 128>}]} {
    %c0 = arith.constant 0 : index
    %c0_0 = arith.constant 0 : index
    %0 = vector.load %arg1[%c0, %c0_0] : memref<16x128xf32, #tpu.memory_space<vmem>>, vector<16x128xf32>
    %c0_1 = arith.constant 0 : index
    %c0_2 = arith.constant 0 : index
    %1 = vector.load %arg2[%c0_1, %c0_2] : memref<16x128xf32, #tpu.memory_space<vmem>>, vector<16x128xf32>
    %c0_3 = arith.constant 0 : index
    %c0_4 = arith.constant 0 : index
    %2 = vector.load %arg3[%c0_3, %c0_4] : memref<16x128xf32, #tpu.memory_space<vmem>>, vector<16x128xf32>
    %c0_5 = arith.constant 0 : index
    %c0_6 = arith.constant 0 : index
    %3 = vector.load %arg4[%c0_5, %c0_6] : memref<128x128xf32, #tpu.memory_space<vmem>>, vector<128x128xf32>
    %cst = arith.constant dense<0.000000e+00> : vector<16x128xf32>
    %4 = tpu.matmul %0, %3, %cst {dimension_numbers = #tpu.dot_dimension_numbers<[1], [0], [0], [1], [0, 0, 1, 1], [], []>} : vector<16x128xf32>, vector<128x128xf32>, vector<16x128xf32> -> vector<16x128xf32>
    %c0_7 = arith.constant 0 : index
    %c0_8 = arith.constant 0 : index
    %5 = vector.load %arg5[%c0_7, %c0_8] : memref<128x128xf32, #tpu.memory_space<vmem>>, vector<128x128xf32>
    %cst_9 = arith.constant dense<0.000000e+00> : vector<16x128xf32>
    %6 = tpu.matmul %1, %5, %cst_9 {dimension_numbers = #tpu.dot_dimension_numbers<[1], [0], [0], [1], [0, 0, 1, 1], [], []>} : vector<16x128xf32>, vector<128x128xf32>, vector<16x128xf32> -> vector<16x128xf32>
    %7 = arith.addf %4, %6 : vector<16x128xf32>
    %c0_10 = arith.constant 0 : index
    %c0_11 = arith.constant 0 : index
    %8 = vector.load %arg6[%c0_10, %c0_11] : memref<128x128xf32, #tpu.memory_space<vmem>>, vector<128x128xf32>
    %cst_12 = arith.constant dense<0.000000e+00> : vector<16x128xf32>
    %9 = tpu.matmul %2, %8, %cst_12 {dimension_numbers = #tpu.dot_dimension_numbers<[1], [0], [0], [1], [0, 0, 1, 1], [], []>} : vector<16x128xf32>, vector<128x128xf32>, vector<16x128xf32> -> vector<16x128xf32>
    %10 = arith.addf %7, %9 : vector<16x128xf32>
    %c0_13 = arith.constant 0 : index
    %c0_14 = arith.constant 0 : index
    %11 = vector.load %arg7[%c0_13, %c0_14] : memref<1x128xf32, #tpu.memory_space<vmem>>, vector<1x128xf32>
    %12 = vector.broadcast %11 : vector<1x128xf32> to vector<16x128xf32>
    %13 = arith.addf %10, %12 : vector<16x128xf32>
    %14 = arith.negf %13 : vector<16x128xf32>
    %15 = math.exp %14 : vector<16x128xf32>
    %cst_15 = arith.constant 1.000000e+00 : f32
    %16 = vector.broadcast %cst_15 : f32 to vector<16x128xf32>
    %17 = arith.addf %16, %15 : vector<16x128xf32>
    %18 = arith.divf %16, %17 : vector<16x128xf32>
    %19 = arith.mulf %13, %18 : vector<16x128xf32>
    %c0_16 = arith.constant 0 : index
    %c0_17 = arith.constant 0 : index
    %20 = vector.load %arg8[%c0_16, %c0_17] : memref<128x128xf32, #tpu.memory_space<vmem>>, vector<128x128xf32>
    %cst_18 = arith.constant dense<0.000000e+00> : vector<16x128xf32>
    %21 = tpu.matmul %19, %20, %cst_18 {dimension_numbers = #tpu.dot_dimension_numbers<[1], [0], [0], [1], [0, 0, 1, 1], [], []>} : vector<16x128xf32>, vector<128x128xf32>, vector<16x128xf32> -> vector<16x128xf32>
    %c0_19 = arith.constant 0 : index
    %c0_20 = arith.constant 0 : index
    %22 = vector.load %arg9[%c0_19, %c0_20] : memref<1x128xf32, #tpu.memory_space<vmem>>, vector<1x128xf32>
    %23 = vector.broadcast %22 : vector<1x128xf32> to vector<16x128xf32>
    %24 = arith.addf %21, %23 : vector<16x128xf32>
    %25 = arith.negf %24 : vector<16x128xf32>
    %26 = math.exp %25 : vector<16x128xf32>
    %cst_21 = arith.constant 1.000000e+00 : f32
    %27 = vector.broadcast %cst_21 : f32 to vector<16x128xf32>
    %28 = arith.addf %27, %26 : vector<16x128xf32>
    %29 = arith.divf %27, %28 : vector<16x128xf32>
    %30 = arith.mulf %24, %29 : vector<16x128xf32>
    %c0_22 = arith.constant 0 : index
    %c0_23 = arith.constant 0 : index
    %31 = vector.load %arg10[%c0_22, %c0_23] : memref<128x128xf32, #tpu.memory_space<vmem>>, vector<128x128xf32>
    %cst_24 = arith.constant dense<0.000000e+00> : vector<16x128xf32>
    %32 = tpu.matmul %30, %31, %cst_24 {dimension_numbers = #tpu.dot_dimension_numbers<[1], [0], [0], [1], [0, 0, 1, 1], [], []>} : vector<16x128xf32>, vector<128x128xf32>, vector<16x128xf32> -> vector<16x128xf32>
    %c0_25 = arith.constant 0 : index
    %c0_26 = arith.constant 0 : index
    %33 = vector.load %arg11[%c0_25, %c0_26] : memref<1x128xf32, #tpu.memory_space<vmem>>, vector<1x128xf32>
    %34 = vector.broadcast %33 : vector<1x128xf32> to vector<16x128xf32>
    %35 = arith.addf %32, %34 : vector<16x128xf32>
    %36 = arith.negf %35 : vector<16x128xf32>
    %37 = math.exp %36 : vector<16x128xf32>
    %cst_27 = arith.constant 1.000000e+00 : f32
    %38 = vector.broadcast %cst_27 : f32 to vector<16x128xf32>
    %39 = arith.addf %38, %37 : vector<16x128xf32>
    %40 = arith.divf %38, %39 : vector<16x128xf32>
    %41 = arith.mulf %35, %40 : vector<16x128xf32>
    %c0_28 = arith.constant 0 : index
    %c0_29 = arith.constant 0 : index
    %42 = vector.load %arg12[%c0_28, %c0_29] : memref<128x128xf32, #tpu.memory_space<vmem>>, vector<128x128xf32>
    %cst_30 = arith.constant dense<0.000000e+00> : vector<16x128xf32>
    %43 = tpu.matmul %41, %42, %cst_30 {dimension_numbers = #tpu.dot_dimension_numbers<[1], [0], [0], [1], [0, 0, 1, 1], [], []>} : vector<16x128xf32>, vector<128x128xf32>, vector<16x128xf32> -> vector<16x128xf32>
    %c0_31 = arith.constant 0 : index
    %c0_32 = arith.constant 0 : index
    %44 = vector.load %arg13[%c0_31, %c0_32] : memref<1x128xf32, #tpu.memory_space<vmem>>, vector<1x128xf32>
    %45 = vector.broadcast %44 : vector<1x128xf32> to vector<16x128xf32>
    %46 = arith.addf %43, %45 : vector<16x128xf32>
    %cst_33 = arith.constant 0.000000e+00 : f32
    %47 = vector.broadcast %cst_33 : f32 to vector<16x128xf32>
    %48 = arith.cmpf oge, %46, %47 : vector<16x128xf32>
    %cst_34 = arith.constant 0.00999999977 : f32
    %49 = vector.broadcast %cst_34 : f32 to vector<16x128xf32>
    %50 = arith.mulf %49, %46 : vector<16x128xf32>
    %51 = arith.select %48, %46, %50 : vector<16x128xi1>, vector<16x128xf32>
    %c0_35 = arith.constant 0 : index
    %c0_36 = arith.constant 0 : index
    %52 = vector.load %arg14[%c0_35, %c0_36] : memref<128x128xf32, #tpu.memory_space<vmem>>, vector<128x128xf32>
    %cst_37 = arith.constant dense<0.000000e+00> : vector<16x128xf32>
    %53 = tpu.matmul %51, %52, %cst_37 {dimension_numbers = #tpu.dot_dimension_numbers<[1], [0], [0], [1], [0, 0, 1, 1], [], []>} : vector<16x128xf32>, vector<128x128xf32>, vector<16x128xf32> -> vector<16x128xf32>
    %c0_38 = arith.constant 0 : index
    %c0_39 = arith.constant 0 : index
    %54 = vector.load %arg15[%c0_38, %c0_39] : memref<1x128xf32, #tpu.memory_space<vmem>>, vector<1x128xf32>
    %55 = vector.broadcast %54 : vector<1x128xf32> to vector<16x128xf32>
    %56 = arith.addf %53, %55 : vector<16x128xf32>
    %57 = arith.negf %56 : vector<16x128xf32>
    %58 = math.exp %57 : vector<16x128xf32>
    %cst_40 = arith.constant 1.000000e+00 : f32
    %59 = vector.broadcast %cst_40 : f32 to vector<16x128xf32>
    %60 = arith.addf %59, %58 : vector<16x128xf32>
    %61 = arith.divf %59, %60 : vector<16x128xf32>
    %62 = arith.mulf %56, %61 : vector<16x128xf32>
    %c0_41 = arith.constant 0 : index
    %c0_42 = arith.constant 0 : index
    %63 = vector.load %arg16[%c0_41, %c0_42] : memref<128x128xf32, #tpu.memory_space<vmem>>, vector<128x128xf32>
    %cst_43 = arith.constant dense<0.000000e+00> : vector<16x128xf32>
    %64 = tpu.matmul %62, %63, %cst_43 {dimension_numbers = #tpu.dot_dimension_numbers<[1], [0], [0], [1], [0, 0, 1, 1], [], []>} : vector<16x128xf32>, vector<128x128xf32>, vector<16x128xf32> -> vector<16x128xf32>
    %c0_44 = arith.constant 0 : index
    %c0_45 = arith.constant 0 : index
    %65 = vector.load %arg17[%c0_44, %c0_45] : memref<1x128xf32, #tpu.memory_space<vmem>>, vector<1x128xf32>
    %66 = vector.broadcast %65 : vector<1x128xf32> to vector<16x128xf32>
    %67 = arith.addf %64, %66 : vector<16x128xf32>
    %68 = arith.addf %67, %2 : vector<16x128xf32>
    %c0_46 = arith.constant 0 : index
    %c0_47 = arith.constant 0 : index
    %69 = vector.load %arg23[%c0_46, %c0_47] : memref<16x128xf32, #tpu.memory_space<vmem>>, vector<16x128xf32>
    tpu.vector_store %arg23[%c0_46, %c0_47], %68 {strides = array<i32>} : memref<16x128xf32, #tpu.memory_space<vmem>>, vector<16x128xf32>,
    %c0_48 = arith.constant 0 : index
    %c0_49 = arith.constant 0 : index
    %70 = vector.load %arg18[%c0_48, %c0_49] : memref<128x128xf32, #tpu.memory_space<vmem>>, vector<128x128xf32>
    %cst_50 = arith.constant dense<0.000000e+00> : vector<16x128xf32>
    %71 = tpu.matmul %1, %70, %cst_50 {dimension_numbers = #tpu.dot_dimension_numbers<[1], [0], [0], [1], [0, 0, 1, 1], [], []>} : vector<16x128xf32>, vector<128x128xf32>, vector<16x128xf32> -> vector<16x128xf32>
    %c0_51 = arith.constant 0 : index
    %c0_52 = arith.constant 0 : index
    %72 = vector.load %arg19[%c0_51, %c0_52] : memref<128x128xf32, #tpu.memory_space<vmem>>, vector<128x128xf32>
    %cst_53 = arith.constant dense<0.000000e+00> : vector<16x128xf32>
    %73 = tpu.matmul %68, %72, %cst_53 {dimension_numbers = #tpu.dot_dimension_numbers<[1], [0], [0], [1], [0, 0, 1, 1], [], []>} : vector<16x128xf32>, vector<128x128xf32>, vector<16x128xf32> -> vector<16x128xf32>
    %74 = arith.addf %71, %73 : vector<16x128xf32>
    %c0_54 = arith.constant 0 : index
    %c0_55 = arith.constant 0 : index
    %75 = vector.load %arg20[%c0_54, %c0_55] : memref<1x128xf32, #tpu.memory_space<vmem>>, vector<1x128xf32>
    %76 = vector.broadcast %75 : vector<1x128xf32> to vector<16x128xf32>
    %77 = arith.addf %74, %76 : vector<16x128xf32>
    %78 = arith.negf %77 : vector<16x128xf32>
    %79 = math.exp %78 : vector<16x128xf32>
    %cst_56 = arith.constant 1.000000e+00 : f32
    %80 = vector.broadcast %cst_56 : f32 to vector<16x128xf32>
    %81 = arith.addf %80, %79 : vector<16x128xf32>
    %82 = arith.divf %80, %81 : vector<16x128xf32>
    %83 = arith.mulf %77, %82 : vector<16x128xf32>
    %c0_57 = arith.constant 0 : index
    %c0_58 = arith.constant 0 : index
    %84 = vector.load %arg21[%c0_57, %c0_58] : memref<128x128xf32, #tpu.memory_space<vmem>>, vector<128x128xf32>
    %cst_59 = arith.constant dense<0.000000e+00> : vector<16x128xf32>
    %85 = tpu.matmul %83, %84, %cst_59 {dimension_numbers = #tpu.dot_dimension_numbers<[1], [0], [0], [1], [0, 0, 1, 1], [], []>} : vector<16x128xf32>, vector<128x128xf32>, vector<16x128xf32> -> vector<16x128xf32>
    %c0_60 = arith.constant 0 : index
    %c0_61 = arith.constant 0 : index
    %86 = vector.load %arg22[%c0_60, %c0_61] : memref<1x128xf32, #tpu.memory_space<vmem>>, vector<1x128xf32>
    %87 = vector.broadcast %86 : vector<1x128xf32> to vector<16x128xf32>
    %88 = arith.addf %85, %87 : vector<16x128xf32>
    %c0_62 = arith.constant 0 : index
    %c0_63 = arith.constant 0 : index
    %89 = vector.load %arg24[%c0_62, %c0_63] : memref<16x128xf32, #tpu.memory_space<vmem>>, vector<16x128xf32>
    tpu.vector_store %arg24[%c0_62, %c0_63], %88 {strides = array<i32>} : memref<16x128xf32, #tpu.memory_space<vmem>>, vector<16x128xf32>,
    return
  }
  func.func @transform_0(%arg0: i32) -> (i32, i32) {
    %c0_i32 = arith.constant 0 : i32
    %c0_i32_0 = arith.constant 0 : i32
    return %arg0, %c0_i32 : i32, i32
  }
  func.func @transform_1(%arg0: i32) -> (i32, i32) {
    %c0_i32 = arith.constant 0 : i32
    %c0_i32_0 = arith.constant 0 : i32
    return %arg0, %c0_i32 : i32, i32
  }
  func.func @transform_2(%arg0: i32) -> (i32, i32) {
    %c0_i32 = arith.constant 0 : i32
    %c0_i32_0 = arith.constant 0 : i32
    return %arg0, %c0_i32 : i32, i32
  }
  func.func @transform_3(%arg0: i32) -> (i32, i32) {
    %c0_i32 = arith.constant 0 : i32
    %c0_i32_0 = arith.constant 0 : i32
    %c0_i32_1 = arith.constant 0 : i32
    return %c0_i32, %c0_i32_0 : i32, i32
  }
  func.func @transform_4(%arg0: i32) -> (i32, i32) {
    %c0_i32 = arith.constant 0 : i32
    %c0_i32_0 = arith.constant 0 : i32
    %c0_i32_1 = arith.constant 0 : i32
    return %c0_i32, %c0_i32_0 : i32, i32
  }
  func.func @transform_5(%arg0: i32) -> (i32, i32) {
    %c0_i32 = arith.constant 0 : i32
    %c0_i32_0 = arith.constant 0 : i32
    %c0_i32_1 = arith.constant 0 : i32
    return %c0_i32, %c0_i32_0 : i32, i32
  }
  func.func @transform_6(%arg0: i32) -> (i32, i32) {
    %c0_i32 = arith.constant 0 : i32
    %c0_i32_0 = arith.constant 0 : i32
    %c0_i32_1 = arith.constant 0 : i32
    return %c0_i32, %c0_i32_0 : i32, i32
  }
  func.func @transform_7(%arg0: i32) -> (i32, i32) {
    %c0_i32 = arith.constant 0 : i32
    %c0_i32_0 = arith.constant 0 : i32
    %c0_i32_1 = arith.constant 0 : i32
    return %c0_i32, %c0_i32_0 : i32, i32
  }
  func.func @transform_8(%arg0: i32) -> (i32, i32) {
    %c0_i32 = arith.constant 0 : i32
    %c0_i32_0 = arith.constant 0 : i32
    %c0_i32_1 = arith.constant 0 : i32
    return %c0_i32, %c0_i32_0 : i32, i32
  }
  func.func @transform_9(%arg0: i32) -> (i32, i32) {
    %c0_i32 = arith.constant 0 : i32
    %c0_i32_0 = arith.constant 0 : i32
    %c0_i32_1 = arith.constant 0 : i32
    return %c0_i32, %c0_i32_0 : i32, i32
  }
  func.func @transform_10(%arg0: i32) -> (i32, i32) {
    %c0_i32 = arith.constant 0 : i32
    %c0_i32_0 = arith.constant 0 : i32
    %c0_i32_1 = arith.constant 0 : i32
    return %c0_i32, %c0_i32_0 : i32, i32
  }
  func.func @transform_11(%arg0: i32) -> (i32, i32) {
    %c0_i32 = arith.constant 0 : i32
    %c0_i32_0 = arith.constant 0 : i32
    %c0_i32_1 = arith.constant 0 : i32
    return %c0_i32, %c0_i32_0 : i32, i32
  }
  func.func @transform_12(%arg0: i32) -> (i32, i32) {
    %c0_i32 = arith.constant 0 : i32
    %c0_i32_0 = arith.constant 0 : i32
    %c0_i32_1 = arith.constant 0 : i32
    return %c0_i32, %c0_i32_0 : i32, i32
  }
  func.func @transform_13(%arg0: i32) -> (i32, i32) {
    %c0_i32 = arith.constant 0 : i32
    %c0_i32_0 = arith.constant 0 : i32
    %c0_i32_1 = arith.constant 0 : i32
    return %c0_i32, %c0_i32_0 : i32, i32
  }
  func.func @transform_14(%arg0: i32) -> (i32, i32) {
    %c0_i32 = arith.constant 0 : i32
    %c0_i32_0 = arith.constant 0 : i32
    %c0_i32_1 = arith.constant 0 : i32
    return %c0_i32, %c0_i32_0 : i32, i32
  }
  func.func @transform_15(%arg0: i32) -> (i32, i32) {
    %c0_i32 = arith.constant 0 : i32
    %c0_i32_0 = arith.constant 0 : i32
    %c0_i32_1 = arith.constant 0 : i32
    return %c0_i32, %c0_i32_0 : i32, i32
  }
  func.func @transform_16(%arg0: i32) -> (i32, i32) {
    %c0_i32 = arith.constant 0 : i32
    %c0_i32_0 = arith.constant 0 : i32
    %c0_i32_1 = arith.constant 0 : i32
    return %c0_i32, %c0_i32_0 : i32, i32
  }
  func.func @transform_17(%arg0: i32) -> (i32, i32) {
    %c0_i32 = arith.constant 0 : i32
    %c0_i32_0 = arith.constant 0 : i32
    %c0_i32_1 = arith.constant 0 : i32
    return %c0_i32, %c0_i32_0 : i32, i32
  }
  func.func @transform_18(%arg0: i32) -> (i32, i32) {
    %c0_i32 = arith.constant 0 : i32
    %c0_i32_0 = arith.constant 0 : i32
    %c0_i32_1 = arith.constant 0 : i32
    return %c0_i32, %c0_i32_0 : i32, i32
  }
  func.func @transform_19(%arg0: i32) -> (i32, i32) {
    %c0_i32 = arith.constant 0 : i32
    %c0_i32_0 = arith.constant 0 : i32
    %c0_i32_1 = arith.constant 0 : i32
    return %c0_i32, %c0_i32_0 : i32, i32
  }
  func.func @transform_20(%arg0: i32) -> (i32, i32) {
    %c0_i32 = arith.constant 0 : i32
    %c0_i32_0 = arith.constant 0 : i32
    %c0_i32_1 = arith.constant 0 : i32
    return %c0_i32, %c0_i32_0 : i32, i32
  }
  func.func @transform_21(%arg0: i32) -> (i32, i32) {
    %c0_i32 = arith.constant 0 : i32
    %c0_i32_0 = arith.constant 0 : i32
    %c0_i32_1 = arith.constant 0 : i32
    return %c0_i32, %c0_i32_0 : i32, i32
  }
  func.func @transform_22(%arg0: i32) -> (i32, i32) {
    %c0_i32 = arith.constant 0 : i32
    %c0_i32_0 = arith.constant 0 : i32
    return %arg0, %c0_i32 : i32, i32
  }
  func.func @transform_23(%arg0: i32) -> (i32, i32) {
    %c0_i32 = arith.constant 0 : i32
    %c0_i32_0 = arith.constant 0 : i32
    return %arg0, %c0_i32 : i32, i32
  }
}

module attributes {stable_mosaic.version = 11 : i64} {
  func.func @head_kernel(%arg0: i32, %arg1: memref<6xi32, #tpu.memory_space<smem>>, %arg2: memref<8x128xf32, #tpu.memory_space<vmem>>, %arg3: memref<8x128xf32, #tpu.memory_space<vmem>>, %arg4: memref<8x128xf32, #tpu.memory_space<vmem>>, %arg5: memref<1x128x128xf32, #tpu.memory_space<vmem>>, %arg6: memref<1x128x128xf32, #tpu.memory_space<vmem>>, %arg7: memref<1x128x128xf32, #tpu.memory_space<vmem>>, %arg8: memref<1x1x128xf32, #tpu.memory_space<vmem>>, %arg9: memref<1x128x128xf32, #tpu.memory_space<vmem>>, %arg10: memref<1x1x128xf32, #tpu.memory_space<vmem>>, %arg11: memref<1x128x128xf32, #tpu.memory_space<vmem>>, %arg12: memref<1x1x128xf32, #tpu.memory_space<vmem>>, %arg13: memref<1x128x128xf32, #tpu.memory_space<vmem>>, %arg14: memref<1x1x128xf32, #tpu.memory_space<vmem>>, %arg15: memref<1x128x128xf32, #tpu.memory_space<vmem>>, %arg16: memref<1x1x128xf32, #tpu.memory_space<vmem>>, %arg17: memref<8x128xf32, #tpu.memory_space<vmem>>) attributes {dimension_semantics = [#tpu.dimension_semantics<parallel>], iteration_bounds = array<i64: 6>, scalar_prefetch = 1 : i64, scratch_operands = 0 : i64, tpu.core_type = #tpu.core_type<tc>, window_params = [{transform_indices = @transform_0, window_bounds = array<i64: 8, 128>}, {transform_indices = @transform_1, window_bounds = array<i64: 8, 128>}, {transform_indices = @transform_2, window_bounds = array<i64: 8, 128>}, {transform_indices = @transform_3, window_bounds = array<i64: 1, 128, 128>}, {transform_indices = @transform_4, window_bounds = array<i64: 1, 128, 128>}, {transform_indices = @transform_5, window_bounds = array<i64: 1, 128, 128>}, {transform_indices = @transform_6, window_bounds = array<i64: 1, 1, 128>}, {transform_indices = @transform_7, window_bounds = array<i64: 1, 128, 128>}, {transform_indices = @transform_8, window_bounds = array<i64: 1, 1, 128>}, {transform_indices = @transform_9, window_bounds = array<i64: 1, 128, 128>}, {transform_indices = @transform_10, window_bounds = array<i64: 1, 1, 128>}, {transform_indices = @transform_11, window_bounds = array<i64: 1, 128, 128>}, {transform_indices = @transform_12, window_bounds = array<i64: 1, 1, 128>}, {transform_indices = @transform_13, window_bounds = array<i64: 1, 128, 128>}, {transform_indices = @transform_14, window_bounds = array<i64: 1, 1, 128>}, {transform_indices = @transform_15, window_bounds = array<i64: 8, 128>}]} {
    %c0 = arith.constant 0 : index
    %c0_0 = arith.constant 0 : index
    %0 = vector.load %arg2[%c0, %c0_0] : memref<8x128xf32, #tpu.memory_space<vmem>>, vector<8x128xf32>
    %c0_1 = arith.constant 0 : index
    %c0_2 = arith.constant 0 : index
    %c0_3 = arith.constant 0 : index
    %1 = vector.load %arg5[%c0_1, %c0_2, %c0_3] : memref<1x128x128xf32, #tpu.memory_space<vmem>>, vector<1x128x128xf32>
    %2 = vector.shape_cast %1 : vector<1x128x128xf32> to vector<128x128xf32>
    %cst = arith.constant dense<0.000000e+00> : vector<8x128xf32>
    %3 = tpu.matmul %0, %2, %cst {dimension_numbers = #tpu.dot_dimension_numbers<[1], [0], [0], [1], [0, 0, 1, 1], [], []>} : vector<8x128xf32>, vector<128x128xf32>, vector<8x128xf32> -> vector<8x128xf32>
    %c0_4 = arith.constant 0 : index
    %c0_5 = arith.constant 0 : index
    %4 = vector.load %arg3[%c0_4, %c0_5] : memref<8x128xf32, #tpu.memory_space<vmem>>, vector<8x128xf32>
    %c0_6 = arith.constant 0 : index
    %c0_7 = arith.constant 0 : index
    %c0_8 = arith.constant 0 : index
    %5 = vector.load %arg6[%c0_6, %c0_7, %c0_8] : memref<1x128x128xf32, #tpu.memory_space<vmem>>, vector<1x128x128xf32>
    %6 = vector.shape_cast %5 : vector<1x128x128xf32> to vector<128x128xf32>
    %cst_9 = arith.constant dense<0.000000e+00> : vector<8x128xf32>
    %7 = tpu.matmul %4, %6, %cst_9 {dimension_numbers = #tpu.dot_dimension_numbers<[1], [0], [0], [1], [0, 0, 1, 1], [], []>} : vector<8x128xf32>, vector<128x128xf32>, vector<8x128xf32> -> vector<8x128xf32>
    %8 = arith.addf %3, %7 : vector<8x128xf32>
    %c0_10 = arith.constant 0 : index
    %c0_11 = arith.constant 0 : index
    %9 = vector.load %arg4[%c0_10, %c0_11] : memref<8x128xf32, #tpu.memory_space<vmem>>, vector<8x128xf32>
    %c0_12 = arith.constant 0 : index
    %c0_13 = arith.constant 0 : index
    %c0_14 = arith.constant 0 : index
    %10 = vector.load %arg7[%c0_12, %c0_13, %c0_14] : memref<1x128x128xf32, #tpu.memory_space<vmem>>, vector<1x128x128xf32>
    %11 = vector.shape_cast %10 : vector<1x128x128xf32> to vector<128x128xf32>
    %cst_15 = arith.constant dense<0.000000e+00> : vector<8x128xf32>
    %12 = tpu.matmul %9, %11, %cst_15 {dimension_numbers = #tpu.dot_dimension_numbers<[1], [0], [0], [1], [0, 0, 1, 1], [], []>} : vector<8x128xf32>, vector<128x128xf32>, vector<8x128xf32> -> vector<8x128xf32>
    %13 = arith.addf %8, %12 : vector<8x128xf32>
    %c0_16 = arith.constant 0 : index
    %c0_17 = arith.constant 0 : index
    %c0_18 = arith.constant 0 : index
    %14 = vector.load %arg8[%c0_16, %c0_17, %c0_18] : memref<1x1x128xf32, #tpu.memory_space<vmem>>, vector<1x1x128xf32>
    %15 = vector.shape_cast %14 : vector<1x1x128xf32> to vector<1x128xf32>
    %16 = vector.broadcast %15 : vector<1x128xf32> to vector<8x128xf32>
    %17 = arith.addf %13, %16 : vector<8x128xf32>
    %18 = arith.negf %17 : vector<8x128xf32>
    %19 = math.exp %18 : vector<8x128xf32>
    %cst_19 = arith.constant 1.000000e+00 : f32
    %20 = vector.broadcast %cst_19 : f32 to vector<8x128xf32>
    %21 = arith.addf %20, %19 : vector<8x128xf32>
    %22 = arith.divf %20, %21 : vector<8x128xf32>
    %23 = arith.mulf %17, %22 : vector<8x128xf32>
    %c0_20 = arith.constant 0 : index
    %c0_21 = arith.constant 0 : index
    %c0_22 = arith.constant 0 : index
    %24 = vector.load %arg9[%c0_20, %c0_21, %c0_22] : memref<1x128x128xf32, #tpu.memory_space<vmem>>, vector<1x128x128xf32>
    %25 = vector.shape_cast %24 : vector<1x128x128xf32> to vector<128x128xf32>
    %cst_23 = arith.constant dense<0.000000e+00> : vector<8x128xf32>
    %26 = tpu.matmul %23, %25, %cst_23 {dimension_numbers = #tpu.dot_dimension_numbers<[1], [0], [0], [1], [0, 0, 1, 1], [], []>} : vector<8x128xf32>, vector<128x128xf32>, vector<8x128xf32> -> vector<8x128xf32>
    %c0_24 = arith.constant 0 : index
    %c0_25 = arith.constant 0 : index
    %c0_26 = arith.constant 0 : index
    %27 = vector.load %arg10[%c0_24, %c0_25, %c0_26] : memref<1x1x128xf32, #tpu.memory_space<vmem>>, vector<1x1x128xf32>
    %28 = vector.shape_cast %27 : vector<1x1x128xf32> to vector<1x128xf32>
    %29 = vector.broadcast %28 : vector<1x128xf32> to vector<8x128xf32>
    %30 = arith.addf %26, %29 : vector<8x128xf32>
    %31 = arith.negf %30 : vector<8x128xf32>
    %32 = math.exp %31 : vector<8x128xf32>
    %cst_27 = arith.constant 1.000000e+00 : f32
    %33 = vector.broadcast %cst_27 : f32 to vector<8x128xf32>
    %34 = arith.addf %33, %32 : vector<8x128xf32>
    %35 = arith.divf %33, %34 : vector<8x128xf32>
    %36 = arith.mulf %30, %35 : vector<8x128xf32>
    %c0_28 = arith.constant 0 : index
    %c0_29 = arith.constant 0 : index
    %c0_30 = arith.constant 0 : index
    %37 = vector.load %arg11[%c0_28, %c0_29, %c0_30] : memref<1x128x128xf32, #tpu.memory_space<vmem>>, vector<1x128x128xf32>
    %38 = vector.shape_cast %37 : vector<1x128x128xf32> to vector<128x128xf32>
    %cst_31 = arith.constant dense<0.000000e+00> : vector<8x128xf32>
    %39 = tpu.matmul %36, %38, %cst_31 {dimension_numbers = #tpu.dot_dimension_numbers<[1], [0], [0], [1], [0, 0, 1, 1], [], []>} : vector<8x128xf32>, vector<128x128xf32>, vector<8x128xf32> -> vector<8x128xf32>
    %c0_32 = arith.constant 0 : index
    %c0_33 = arith.constant 0 : index
    %c0_34 = arith.constant 0 : index
    %40 = vector.load %arg12[%c0_32, %c0_33, %c0_34] : memref<1x1x128xf32, #tpu.memory_space<vmem>>, vector<1x1x128xf32>
    %41 = vector.shape_cast %40 : vector<1x1x128xf32> to vector<1x128xf32>
    %42 = vector.broadcast %41 : vector<1x128xf32> to vector<8x128xf32>
    %43 = arith.addf %39, %42 : vector<8x128xf32>
    %44 = arith.negf %43 : vector<8x128xf32>
    %45 = math.exp %44 : vector<8x128xf32>
    %cst_35 = arith.constant 1.000000e+00 : f32
    %46 = vector.broadcast %cst_35 : f32 to vector<8x128xf32>
    %47 = arith.addf %46, %45 : vector<8x128xf32>
    %48 = arith.divf %46, %47 : vector<8x128xf32>
    %49 = arith.mulf %43, %48 : vector<8x128xf32>
    %c0_36 = arith.constant 0 : index
    %c0_37 = arith.constant 0 : index
    %c0_38 = arith.constant 0 : index
    %50 = vector.load %arg13[%c0_36, %c0_37, %c0_38] : memref<1x128x128xf32, #tpu.memory_space<vmem>>, vector<1x128x128xf32>
    %51 = vector.shape_cast %50 : vector<1x128x128xf32> to vector<128x128xf32>
    %cst_39 = arith.constant dense<0.000000e+00> : vector<8x128xf32>
    %52 = tpu.matmul %49, %51, %cst_39 {dimension_numbers = #tpu.dot_dimension_numbers<[1], [0], [0], [1], [0, 0, 1, 1], [], []>} : vector<8x128xf32>, vector<128x128xf32>, vector<8x128xf32> -> vector<8x128xf32>
    %c0_40 = arith.constant 0 : index
    %c0_41 = arith.constant 0 : index
    %c0_42 = arith.constant 0 : index
    %53 = vector.load %arg14[%c0_40, %c0_41, %c0_42] : memref<1x1x128xf32, #tpu.memory_space<vmem>>, vector<1x1x128xf32>
    %54 = vector.shape_cast %53 : vector<1x1x128xf32> to vector<1x128xf32>
    %55 = vector.broadcast %54 : vector<1x128xf32> to vector<8x128xf32>
    %56 = arith.addf %52, %55 : vector<8x128xf32>
    %cst_43 = arith.constant 0.000000e+00 : f32
    %57 = vector.broadcast %cst_43 : f32 to vector<8x128xf32>
    %58 = arith.cmpf oge, %56, %57 : vector<8x128xf32>
    %cst_44 = arith.constant 0.00999999977 : f32
    %59 = vector.broadcast %cst_44 : f32 to vector<8x128xf32>
    %60 = arith.mulf %59, %56 : vector<8x128xf32>
    %61 = arith.select %58, %56, %60 : vector<8x128xi1>, vector<8x128xf32>
    %c0_45 = arith.constant 0 : index
    %c0_46 = arith.constant 0 : index
    %c0_47 = arith.constant 0 : index
    %62 = vector.load %arg15[%c0_45, %c0_46, %c0_47] : memref<1x128x128xf32, #tpu.memory_space<vmem>>, vector<1x128x128xf32>
    %63 = vector.shape_cast %62 : vector<1x128x128xf32> to vector<128x128xf32>
    %cst_48 = arith.constant dense<0.000000e+00> : vector<8x128xf32>
    %64 = tpu.matmul %61, %63, %cst_48 {dimension_numbers = #tpu.dot_dimension_numbers<[1], [0], [0], [1], [0, 0, 1, 1], [], []>} : vector<8x128xf32>, vector<128x128xf32>, vector<8x128xf32> -> vector<8x128xf32>
    %c0_49 = arith.constant 0 : index
    %c0_50 = arith.constant 0 : index
    %c0_51 = arith.constant 0 : index
    %65 = vector.load %arg16[%c0_49, %c0_50, %c0_51] : memref<1x1x128xf32, #tpu.memory_space<vmem>>, vector<1x1x128xf32>
    %66 = vector.shape_cast %65 : vector<1x1x128xf32> to vector<1x128xf32>
    %67 = vector.broadcast %66 : vector<1x128xf32> to vector<8x128xf32>
    %68 = arith.addf %64, %67 : vector<8x128xf32>
    %c0_52 = arith.constant 0 : index
    %c0_53 = arith.constant 0 : index
    %69 = vector.load %arg17[%c0_52, %c0_53] : memref<8x128xf32, #tpu.memory_space<vmem>>, vector<8x128xf32>
    tpu.vector_store %arg17[%c0_52, %c0_53], %68 {strides = array<i32>} : memref<8x128xf32, #tpu.memory_space<vmem>>, vector<8x128xf32>,
    return
  }
  func.func @transform_0(%arg0: i32, %arg1: memref<6xi32, #tpu.memory_space<smem>>) -> (i32, i32) {
    %c0_i32 = arith.constant 0 : i32
    %c0_i32_0 = arith.constant 0 : i32
    return %arg0, %c0_i32 : i32, i32
  }
  func.func @transform_1(%arg0: i32, %arg1: memref<6xi32, #tpu.memory_space<smem>>) -> (i32, i32) {
    %c0_i32 = arith.constant 0 : i32
    %c0_i32_0 = arith.constant 0 : i32
    return %arg0, %c0_i32 : i32, i32
  }
  func.func @transform_2(%arg0: i32, %arg1: memref<6xi32, #tpu.memory_space<smem>>) -> (i32, i32) {
    %c0_i32 = arith.constant 0 : i32
    %c0_i32_0 = arith.constant 0 : i32
    return %arg0, %c0_i32 : i32, i32
  }
  func.func @transform_3(%arg0: i32, %arg1: memref<6xi32, #tpu.memory_space<smem>>) -> (i32, i32, i32) {
    %0 = arith.index_cast %arg0 : i32 to index
    %1 = memref.load %arg1[%0] : memref<6xi32, #tpu.memory_space<smem>>
    %c0_i32 = arith.constant 0 : i32
    %c0_i32_0 = arith.constant 0 : i32
    %c0_i32_1 = arith.constant 0 : i32
    return %1, %c0_i32, %c0_i32_0 : i32, i32, i32
  }
  func.func @transform_4(%arg0: i32, %arg1: memref<6xi32, #tpu.memory_space<smem>>) -> (i32, i32, i32) {
    %0 = arith.index_cast %arg0 : i32 to index
    %1 = memref.load %arg1[%0] : memref<6xi32, #tpu.memory_space<smem>>
    %c0_i32 = arith.constant 0 : i32
    %c0_i32_0 = arith.constant 0 : i32
    %c0_i32_1 = arith.constant 0 : i32
    return %1, %c0_i32, %c0_i32_0 : i32, i32, i32
  }
  func.func @transform_5(%arg0: i32, %arg1: memref<6xi32, #tpu.memory_space<smem>>) -> (i32, i32, i32) {
    %0 = arith.index_cast %arg0 : i32 to index
    %1 = memref.load %arg1[%0] : memref<6xi32, #tpu.memory_space<smem>>
    %c0_i32 = arith.constant 0 : i32
    %c0_i32_0 = arith.constant 0 : i32
    %c0_i32_1 = arith.constant 0 : i32
    return %1, %c0_i32, %c0_i32_0 : i32, i32, i32
  }
  func.func @transform_6(%arg0: i32, %arg1: memref<6xi32, #tpu.memory_space<smem>>) -> (i32, i32, i32) {
    %0 = arith.index_cast %arg0 : i32 to index
    %1 = memref.load %arg1[%0] : memref<6xi32, #tpu.memory_space<smem>>
    %c0_i32 = arith.constant 0 : i32
    %c0_i32_0 = arith.constant 0 : i32
    %c0_i32_1 = arith.constant 0 : i32
    return %1, %c0_i32, %c0_i32_0 : i32, i32, i32
  }
  func.func @transform_7(%arg0: i32, %arg1: memref<6xi32, #tpu.memory_space<smem>>) -> (i32, i32, i32) {
    %0 = arith.index_cast %arg0 : i32 to index
    %1 = memref.load %arg1[%0] : memref<6xi32, #tpu.memory_space<smem>>
    %c0_i32 = arith.constant 0 : i32
    %c0_i32_0 = arith.constant 0 : i32
    %c0_i32_1 = arith.constant 0 : i32
    return %1, %c0_i32, %c0_i32_0 : i32, i32, i32
  }
  func.func @transform_8(%arg0: i32, %arg1: memref<6xi32, #tpu.memory_space<smem>>) -> (i32, i32, i32) {
    %0 = arith.index_cast %arg0 : i32 to index
    %1 = memref.load %arg1[%0] : memref<6xi32, #tpu.memory_space<smem>>
    %c0_i32 = arith.constant 0 : i32
    %c0_i32_0 = arith.constant 0 : i32
    %c0_i32_1 = arith.constant 0 : i32
    return %1, %c0_i32, %c0_i32_0 : i32, i32, i32
  }
  func.func @transform_9(%arg0: i32, %arg1: memref<6xi32, #tpu.memory_space<smem>>) -> (i32, i32, i32) {
    %0 = arith.index_cast %arg0 : i32 to index
    %1 = memref.load %arg1[%0] : memref<6xi32, #tpu.memory_space<smem>>
    %c0_i32 = arith.constant 0 : i32
    %c0_i32_0 = arith.constant 0 : i32
    %c0_i32_1 = arith.constant 0 : i32
    return %1, %c0_i32, %c0_i32_0 : i32, i32, i32
  }
  func.func @transform_10(%arg0: i32, %arg1: memref<6xi32, #tpu.memory_space<smem>>) -> (i32, i32, i32) {
    %0 = arith.index_cast %arg0 : i32 to index
    %1 = memref.load %arg1[%0] : memref<6xi32, #tpu.memory_space<smem>>
    %c0_i32 = arith.constant 0 : i32
    %c0_i32_0 = arith.constant 0 : i32
    %c0_i32_1 = arith.constant 0 : i32
    return %1, %c0_i32, %c0_i32_0 : i32, i32, i32
  }
  func.func @transform_11(%arg0: i32, %arg1: memref<6xi32, #tpu.memory_space<smem>>) -> (i32, i32, i32) {
    %0 = arith.index_cast %arg0 : i32 to index
    %1 = memref.load %arg1[%0] : memref<6xi32, #tpu.memory_space<smem>>
    %c0_i32 = arith.constant 0 : i32
    %c0_i32_0 = arith.constant 0 : i32
    %c0_i32_1 = arith.constant 0 : i32
    return %1, %c0_i32, %c0_i32_0 : i32, i32, i32
  }
  func.func @transform_12(%arg0: i32, %arg1: memref<6xi32, #tpu.memory_space<smem>>) -> (i32, i32, i32) {
    %0 = arith.index_cast %arg0 : i32 to index
    %1 = memref.load %arg1[%0] : memref<6xi32, #tpu.memory_space<smem>>
    %c0_i32 = arith.constant 0 : i32
    %c0_i32_0 = arith.constant 0 : i32
    %c0_i32_1 = arith.constant 0 : i32
    return %1, %c0_i32, %c0_i32_0 : i32, i32, i32
  }
  func.func @transform_13(%arg0: i32, %arg1: memref<6xi32, #tpu.memory_space<smem>>) -> (i32, i32, i32) {
    %0 = arith.index_cast %arg0 : i32 to index
    %1 = memref.load %arg1[%0] : memref<6xi32, #tpu.memory_space<smem>>
    %c0_i32 = arith.constant 0 : i32
    %c0_i32_0 = arith.constant 0 : i32
    %c0_i32_1 = arith.constant 0 : i32
    return %1, %c0_i32, %c0_i32_0 : i32, i32, i32
  }
  func.func @transform_14(%arg0: i32, %arg1: memref<6xi32, #tpu.memory_space<smem>>) -> (i32, i32, i32) {
    %0 = arith.index_cast %arg0 : i32 to index
    %1 = memref.load %arg1[%0] : memref<6xi32, #tpu.memory_space<smem>>
    %c0_i32 = arith.constant 0 : i32
    %c0_i32_0 = arith.constant 0 : i32
    %c0_i32_1 = arith.constant 0 : i32
    return %1, %c0_i32, %c0_i32_0 : i32, i32, i32
  }
  func.func @transform_15(%arg0: i32, %arg1: memref<6xi32, #tpu.memory_space<smem>>) -> (i32, i32) {
    %c0_i32 = arith.constant 0 : i32
    %c0_i32_0 = arith.constant 0 : i32
    return %arg0, %c0_i32 : i32, i32
  }
}

</mosaic_0001>

<bundles_post_ra>
// kernel: custom-call
= control target key start
LH: loop header
LB: loop body
LE: loop exit
PB: predicated region body
PF: predicated region fallthrough
CT: control target
= control target key end

     0   :  { %s6_s0 = inlined_call_operand.vmem [shape: u32[6], index: 0, kind: output, shape index: {}]  }

// kernel: edge_extraction_forward.2
= control target key start
LH: loop header
LB: loop body
LE: loop exit
PB: predicated region body
PF: predicated region fallthrough
CT: control target
= control target key end

     0   :  { %s1577_s5 = inlined_call_operand.vmem [shape: f32[128,128], index: 5, kind: input, shape index: {}]   ;;  %s1578_s4 = inlined_call_operand.vmem [shape: f32[128,128], index: 4, kind: input, shape index: {}]   ;;  %s1579_s3 = inlined_call_operand.vmem [shape: f32[128,128], index: 3, kind: input, shape index: {}]   ;;  %s1580_s2 = inlined_call_operand.vmem [shape: f32[16,128], index: 2, kind: input, shape index: {}]   ;;  %s1581_s1 = inlined_call_operand.vmem [shape: f32[16,128], index: 1, kind: input, shape index: {}]   ;;  %s1582_s0 = inlined_call_operand.vmem [shape: f32[16,128], index: 0, kind: input, shape index: {}]   ;;  %s1583_s6 = inlined_call_operand.vmem [shape: f32[1,128], index: 6, kind: input, shape index: {}]   ;;  %s1584_s8 = inlined_call_operand.vmem [shape: f32[1,128], index: 8, kind: input, shape index: {}]   ;;  %s1585_s7 = inlined_call_operand.vmem [shape: f32[128,128], index: 7, kind: input, shape index: {}]   ;;  %s1586_s10 = inlined_call_operand.vmem [shape: f32[1,128], index: 10, kind: input, shape index: {}]   ;;  %s1587_s9 = inlined_call_operand.vmem [shape: f32[128,128], index: 9, kind: input, shape index: {}]   ;;  %s1588_s12 = inlined_call_operand.vmem [shape: f32[1,128], index: 12, kind: input, shape index: {}]   ;;  %s1589_s11 = inlined_call_operand.vmem [shape: f32[128,128], index: 11, kind: input, shape index: {}]   ;;  %s1590_s13 = inlined_call_operand.vmem [shape: f32[128,128], index: 13, kind: input, shape index: {}]   ;;  %s1591_s14 = inlined_call_operand.vmem [shape: f32[1,128], index: 14, kind: input, shape index: {}]   ;;  %s1592_s16 = inlined_call_operand.vmem [shape: f32[1,128], index: 16, kind: input, shape index: {}]   ;;  %s1593_s15 = inlined_call_operand.vmem [shape: f32[128,128], index: 15, kind: input, shape index: {}]   ;;  %s1594_s18 = inlined_call_operand.vmem [shape: f32[128,128], index: 18, kind: input, shape index: {}]   ;;  %s1595_s17 = inlined_call_operand.vmem [shape: f32[128,128], index: 17, kind: input, shape index: {}]   ;;  %s1596_s22 = inlined_call_operand.vmem [shape: f32[16,128], index: 22, kind: output, shape index: {0}]   ;;  %s1597_s19 = inlined_call_operand.vmem [shape: f32[1,128], index: 19, kind: input, shape index: {}]   ;;  %s1598_s21 = inlined_call_operand.vmem [shape: f32[1,128], index: 21, kind: input, shape index: {}]   ;;  %s1599_s20 = inlined_call_operand.vmem [shape: f32[128,128], index: 20, kind: input, shape index: {}]   ;;  %s1600_s23 = inlined_call_operand.vmem [shape: f32[16,128], index: 23, kind: output, shape index: {1}]  }
   0x1   :  { %1607 = sst [smem:[#allocation2_spill]] %s1577_s5  ;;  %v259_v54 = vld [vmem:[%s1585_s7 + $0x78] sm:$0xff]  ;;  %v258_v55 = vld [vmem:[%s1585_s7 + $0x70] sm:$0xff]  ;;  %v257_v56 = vld [vmem:[%s1585_s7 + $0x68] sm:$0xff] }
   0x2   :  { %1608 = sst [smem:[#allocation3_spill]] %s1578_s4  ;;  %264 = vmatpush.msra.mxu3 %v259_v54  ;;  %v256_v57 = vld [vmem:[%s1585_s7 + $0x60] sm:$0xff]  ;;  %v255_v58 = vld [vmem:[%s1585_s7 + $0x58] sm:$0xff]  ;;  %v254_v59 = vld [vmem:[%s1585_s7 + $0x50] sm:$0xff] }
   0x3   :  { %1609 = sst [smem:[#allocation4_spill]] %s1579_s3  ;;  %v253_v60 = vld [vmem:[%s1585_s7 + $0x48] sm:$0xff]  ;;  %v252_v61 = vld [vmem:[%s1585_s7 + $0x40] sm:$0xff]  ;;  %v251_v62 = vld [vmem:[%s1585_s7 + $0x38] sm:$0xff] }
   0x4   :  { %1610 = sst [smem:[#allocation5_spill]] %s1580_s2  ;;  %265 = vmatpush.msra.mxu3 %v258_v55  ;;  %v250_v63 = vld [vmem:[%s1585_s7 + $0x30] sm:$0xff]  ;;  %v339_v54 = vld [vmem:[%s1587_s9 + $0x60] sm:$0xff]  ;;  %v338_v55 = vld [vmem:[%s1587_s9 + $0x58] sm:$0xff] }
   0x5   :  { %1611 = sst [smem:[#allocation6_spill]] %s1581_s1 }
   0x6   :  { %1612 = sst [smem:[#allocation7_spill]] %s1582_s0  ;;  %266 = vmatpush.msra.mxu3 %v257_v56  ;;  %v337_v56 = vld [vmem:[%s1587_s9 + $0x50] sm:$0xff] }
   0x7   :  { %1613 = sst [smem:[#allocation8_spill]] %s1583_s6 }
   0x8   :  { %1614 = sst [smem:[#allocation9_spill]] %s1584_s8  ;;  %267 = vmatpush.msra.mxu3 %v256_v57  ;;  %v336_v57 = vld [vmem:[%s1587_s9 + $0x48] sm:$0xff] }
   0x9   :  { %s1615_s24 = sld [smem:[#allocation2_spill]] }
   0xa   :  { %s1616_s3 = sld [smem:[#allocation3_spill]]  ;;  %268 = vmatpush.msra.mxu3 %v255_v58  ;;  %v335_v58 = vld [vmem:[%s1587_s9 + $0x40] sm:$0xff] }
   0xb   :  { %s1617_s8 = sld [smem:[#allocation4_spill]] }
   0xc   :  { %s1618_s1 = sld [smem:[#allocation5_spill]]  ;;  %269 = vmatpush.msra.mxu3 %v254_v59  ;;  %v334_v59 = vld [vmem:[%s1587_s9 + $0x38] sm:$0xff] }
   0xd   :  { %s1619_s26 = sld [smem:[#allocation6_spill]] }
   0xe   :  { %270 = vmatpush.msra.mxu3 %v253_v60  ;;  %v333_v60 = vld [vmem:[%s1587_s9 + $0x30] sm:$0xff]  ;;  %s1622_s0 = sld [smem:[#allocation9_spill]] }
   0xf   :  { %v172_v0 = vld [vmem:[%s1615_s24 + $0x78] sm:$0xff]  ;;  %v171_v1 = vld [vmem:[%s1615_s24 + $0x70] sm:$0xff]  ;;  %v170_v5 = vld [vmem:[%s1615_s24 + $0x68] sm:$0xff] }
  0x10   :  { %v110_v2 = vld [vmem:[%s1616_s3 + $0x78] sm:$0xff]  ;;  %173 = vmatpush.msra.mxu2 %v172_v0  ;;  %v109_v4 = vld [vmem:[%s1616_s3 + $0x70] sm:$0xff]  ;;  %v108_v7 = vld [vmem:[%s1616_s3 + $0x68] sm:$0xff]  ;;  %271 = vmatpush.msra.mxu3 %v252_v61 }
  0x11   :  { %111 = vmatpush.msra.mxu0 %v110_v2  ;;  %v94_v3 = vld [vmem:[%s1617_s8 + $0x78] sm:$0xff]  ;;  %v93_v6 = vld [vmem:[%s1617_s8 + $0x70] sm:$0xff]  ;;  %v92_v8 = vld [vmem:[%s1617_s8 + $0x68] sm:$0xff] }
  0x12   :  { %134 = vmatpush.msra.mxu1 %v94_v3  ;;  %174 = vmatpush.msra.mxu2 %v171_v1  ;;  %v169_v9 = vld [vmem:[%s1615_s24 + $0x60] sm:$0xff]  ;;  %v168_v12 = vld [vmem:[%s1615_s24 + $0x58] sm:$0xff]  ;;  %v167_v15 = vld [vmem:[%s1615_s24 + $0x50] sm:$0xff] }
  0x13   :  { %112 = vmatpush.msra.mxu0 %v109_v4  ;;  %v107_v10 = vld [vmem:[%s1616_s3 + $0x60] sm:$0xff]  ;;  %v106_v13 = vld [vmem:[%s1616_s3 + $0x58] sm:$0xff]  ;;  %v105_v16 = vld [vmem:[%s1616_s3 + $0x50] sm:$0xff]  ;;  %272 = vmatpush.msra.mxu3 %v251_v62 }
  0x14   :  { %135 = vmatpush.msra.mxu1 %v93_v6  ;;  %175 = vmatpush.msra.mxu2 %v170_v5  ;;  %v91_v11 = vld [vmem:[%s1617_s8 + $0x60] sm:$0xff]  ;;  %v90_v14 = vld [vmem:[%s1617_s8 + $0x58] sm:$0xff]  ;;  %v89_v17 = vld [vmem:[%s1617_s8 + $0x50] sm:$0xff] }
  0x15   :  { %113 = vmatpush.msra.mxu0 %v108_v7  ;;  %v166_v18 = vld [vmem:[%s1615_s24 + $0x48] sm:$0xff]  ;;  %v165_v21 = vld [vmem:[%s1615_s24 + $0x40] sm:$0xff]  ;;  %v164_v24 = vld [vmem:[%s1615_s24 + $0x38] sm:$0xff]  ;;  %273 = vmatpush.msra.mxu3 %v250_v63 }
  0x16   :  { %136 = vmatpush.msra.mxu1 %v92_v8  ;;  %176 = vmatpush.msra.mxu2 %v169_v9  ;;  %v104_v19 = vld [vmem:[%s1616_s3 + $0x48] sm:$0xff]  ;;  %v103_v22 = vld [vmem:[%s1616_s3 + $0x40] sm:$0xff]  ;;  %v102_v25 = vld [vmem:[%s1616_s3 + $0x38] sm:$0xff] }
  0x17   :  { %114 = vmatpush.msra.mxu0 %v107_v10  ;;  %v88_v20 = vld [vmem:[%s1617_s8 + $0x48] sm:$0xff]  ;;  %v87_v23 = vld [vmem:[%s1617_s8 + $0x40] sm:$0xff]  ;;  %v86_v26 = vld [vmem:[%s1617_s8 + $0x38] sm:$0xff] }
  0x18   :  { %137 = vmatpush.msra.mxu1 %v91_v11  ;;  %177 = vmatpush.msra.mxu2 %v168_v12  ;;  %v163_v27 = vld [vmem:[%s1615_s24 + $0x30] sm:$0xff]  ;;  %v162_v30 = vld [vmem:[%s1615_s24 + $0x28] sm:$0xff]  ;;  %v161_v33 = vld [vmem:[%s1615_s24 + $0x20] sm:$0xff] }
  0x19   :  { %115 = vmatpush.msra.mxu0 %v106_v13  ;;  %v101_v28 = vld [vmem:[%s1616_s3 + $0x30] sm:$0xff]  ;;  %v100_v31 = vld [vmem:[%s1616_s3 + $0x28] sm:$0xff]  ;;  %v99_v34 = vld [vmem:[%s1616_s3 + $0x20] sm:$0xff] }
  0x1a   :  { %138 = vmatpush.msra.mxu1 %v90_v14  ;;  %178 = vmatpush.msra.mxu2 %v167_v15  ;;  %v85_v29 = vld [vmem:[%s1617_s8 + $0x30] sm:$0xff]  ;;  %v84_v32 = vld [vmem:[%s1617_s8 + $0x28] sm:$0xff]  ;;  %v83_v35 = vld [vmem:[%s1617_s8 + $0x20] sm:$0xff] }
  0x1b   :  { %116 = vmatpush.msra.mxu0 %v105_v16  ;;  %v160_v36 = vld [vmem:[%s1615_s24 + $0x18] sm:$0xff]  ;;  %v159_v39 = vld [vmem:[%s1615_s24 + $0x10] sm:$0xff]  ;;  %v158_v42 = vld [vmem:[%s1615_s24 + $0x8] sm:$0xff] }
  0x1c   :  { %139 = vmatpush.msra.mxu1 %v89_v17  ;;  %179 = vmatpush.msra.mxu2 %v166_v18  ;;  %v98_v37 = vld [vmem:[%s1616_s3 + $0x18] sm:$0xff]  ;;  %v97_v40 = vld [vmem:[%s1616_s3 + $0x10] sm:$0xff]  ;;  %v96_v43 = vld [vmem:[%s1616_s3 + $0x8] sm:$0xff] }
  0x1d   :  { %117 = vmatpush.msra.mxu0 %v104_v19  ;;  %v82_v38 = vld [vmem:[%s1617_s8 + $0x18] sm:$0xff]  ;;  %v81_v41 = vld [vmem:[%s1617_s8 + $0x10] sm:$0xff]  ;;  %v80_v44 = vld [vmem:[%s1617_s8 + $0x8] sm:$0xff] }
  0x1e   :  { %140 = vmatpush.msra.mxu1 %v88_v20  ;;  %180 = vmatpush.msra.mxu2 %v165_v21  ;;  %v157_v45 = vld [vmem:[%s1615_s24] sm:$0xff]  ;;  %v1122_v51 = vld [vmem:[%s1618_s1 + $0x8] sm:$0xff]  ;;  %v247_v2 = vld [vmem:[%s1585_s7 + $0x18] sm:$0xff] }
  0x1f   :  { %118 = vmatpush.msra.mxu0 %v103_v22  ;;  %v95_v46 = vld [vmem:[%s1616_s3] sm:$0xff]  ;;  %s1620_s3 = sld [smem:[#allocation7_spill]]  ;;  %v1127_v52 = vld [vmem:[%s1619_s26 + $0x8] sm:$0xff]  ;;  %v246_v5 = vld [vmem:[%s1585_s7 + $0x10] sm:$0xff] }
  0x20   :  { %141 = vmatpush.msra.mxu1 %v87_v23  ;;  %181 = vmatpush.msra.mxu2 %v164_v24  ;;  %v1104_v47 = vld [vmem:[%s1618_s1] sm:$0xff]  ;;  %v249_v0 = vld [vmem:[%s1585_s7 + $0x28] sm:$0xff]  ;;  %s1621_s1 = sld [smem:[#allocation8_spill]]  ;;  %v330_v63 = vld [vmem:[%s1587_s9 + $0x18] sm:$0xff] }
  0x21   :  { %119 = vmatpush.msra.mxu0 %v102_v25  ;;  %v79_v48 = vld [vmem:[%s1617_s8] sm:$0xff]  ;;  %274 = vmatpush.msra.mxu3 %v249_v0  ;;  %v245_v7 = vld [vmem:[%s1585_s7 + $0x8] sm:$0xff]  ;;  %v329_v0 = vld [vmem:[%s1587_s9 + $0x10] sm:$0xff] }
  0x22   :  { %142 = vmatpush.msra.mxu1 %v86_v26  ;;  %182 = vmatpush.msra.mxu2 %v163_v27  ;;  %v1112_v49 = vld [vmem:[%s1619_s26] sm:$0xff]  ;;  %v332_v61 = vld [vmem:[%s1587_s9 + $0x28] sm:$0xff] }
  0x23   :  { %120 = vmatpush.msra.mxu0 %v101_v28  ;;  %v248_v1 = vld [vmem:[%s1585_s7 + $0x20] sm:$0xff] }
  0x24   :  { %143 = vmatpush.msra.mxu1 %v85_v29  ;;  %183 = vmatpush.msra.mxu2 %v162_v30  ;;  %v244_v9 = vld [vmem:[%s1585_s7] sm:$0xff] }
  0x25   :  { %121 = vmatpush.msra.mxu0 %v100_v31  ;;  %v73_v50 = vld [vmem:[%s1620_s3] sm:$0xff]  ;;  %v74_v53 = vld [vmem:[%s1620_s3 + $0x8] sm:$0xff]  ;;  %275 = vmatpush.msra.mxu3 %v248_v1 }
  0x26   :  { %144 = vmatpush.msra.mxu1 %v84_v32  ;;  %184 = vmatpush.msra.mxu2 %v161_v33  ;;  %v792_v8 = vld [vmem:[%s1621_s1] ss:$0 sm:$0xff] }
  0x27   :  { %122 = vmatpush.msra.mxu0 %v99_v34  ;;  %276 = vmatpush.msra.mxu3 %v247_v2  ;;  %v331_v62 = vld [vmem:[%s1587_s9 + $0x20] sm:$0xff]  ;;  %v328_v2 = vld [vmem:[%s1587_s9 + $0x8] sm:$0xff] }
  0x28   :  { %145 = vmatpush.msra.mxu1 %v83_v35  ;;  %185 = vmatpush.msra.mxu2 %v160_v36  ;;  %v793_v1 = vld [vmem:[%s1622_s0] ss:$0 sm:$0xff] }
  0x29   :  { %123 = vmatpush.msra.mxu0 %v98_v37  ;;  %277 = vmatpush.msra.mxu3 %v246_v5 }
  0x2a   :  { %146 = vmatpush.msra.mxu1 %v82_v38  ;;  %186 = vmatpush.msra.mxu2 %v159_v39 }
  0x2b   :  { %124 = vmatpush.msra.mxu0 %v97_v40  ;;  %278 = vmatpush.msra.mxu3 %v245_v7 }
  0x2c   :  { %147 = vmatpush.msra.mxu1 %v81_v41  ;;  %187 = vmatpush.msra.mxu2 %v158_v42 }
  0x2d   :  { %125 = vmatpush.msra.mxu0 %v96_v43  ;;  %279 = vmatpush.msra.mxu3 %v244_v9 }
  0x2e   :  { %148 = vmatpush.msra.mxu1 %v80_v44  ;;  %188 = vmatpush.msra.mxu2 %v157_v45 }
  0x2f   :  { %126 = vmatpush.msra.mxu0 %v95_v46  ;;  %189 = vmatmul.f32.vlgmr.msra.gmra.mxu2 %v1104_v47 }
  0x30   :  { %149 = vmatpush.msra.mxu1 %v79_v48  ;;  %127 = vmatmul.f32.vlgmr.msra.gmra.mxu0 %v1112_v49  ;;  %v342_v48 = vld [vmem:[%s1587_s9 + $0x78] sm:$0xff] }
  0x31   :  { %150 = vmatmul.f32.vlgmr.msra.gmra.mxu1 %v73_v50  ;;  %347 = vmatpush.msrb.mxu0 %v342_v48  ;;  %v341_v50 = vld [vmem:[%s1587_s9 + $0x70] sm:$0xff]  ;;  %v414_v48 = vld [vmem:[%s1589_s11 + $0x20] sm:$0xff] }
  0x33   :  { %348 = vmatpush.msrb.mxu0 %v341_v50  ;;  %v413_v50 = vld [vmem:[%s1589_s11 + $0x18] sm:$0xff] }
  0x37   :  { %192 = vmatmul.f32.gmra.mxu2 %v1122_v51 }
  0x38   :  { %130 = vmatmul.f32.gmra.mxu0 %v1127_v52 }
  0x39   :  { %153 = vmatmul.f32.gmra.mxu1 %v74_v53  ;;  %v340_v53 = vld [vmem:[%s1587_s9 + $0x68] sm:$0xff] }
  0x3a   :  { %349 = vmatpush.msrb.mxu0 %v340_v53  ;;  %v412_v53 = vld [vmem:[%s1589_s11 + $0x10] sm:$0xff] }
  0x3c   :  { %350 = vmatpush.msrb.mxu0 %v339_v54  ;;  %v794_v54 = vld [vmem:[%s1586_s10] ss:$0 sm:$0xff] }
  0x3e   :  { %351 = vmatpush.msrb.mxu0 %v338_v55  ;;  %v411_v55 = vld [vmem:[%s1589_s11 + $0x8] sm:$0xff] }
  0x40   :  { %352 = vmatpush.msrb.mxu0 %v337_v56  ;;  %v410_v56 = vld [vmem:[%s1589_s11] sm:$0xff] }
  0x42   :  { %353 = vmatpush.msrb.mxu0 %v336_v57 }
  0x44   :  { %354 = vmatpush.msrb.mxu0 %v335_v58 }
  0x46   :  { %355 = vmatpush.msrb.mxu0 %v334_v59 }
  0x48   :  { %356 = vmatpush.msrb.mxu0 %v333_v60 }
  0x4a   :  { %357 = vmatpush.msrb.mxu0 %v332_v61 }
  0x4c   :  { %358 = vmatpush.msrb.mxu0 %v331_v62  ;;  %v474_v62 = vld [vmem:[%s1590_s13 + $0x78] sm:$0xff] }
  0x4d   :  { %479 = vmatpush.msrb.mxu2 %v474_v62  ;;  %v549_v62 = vld [vmem:[%s1593_s15 + $0x38] sm:$0xff] }
  0x4e   :  { %359 = vmatpush.msrb.mxu0 %v330_v63  ;;  %v473_v63 = vld [vmem:[%s1590_s13 + $0x70] sm:$0xff] }
  0x4f   :  { %480 = vmatpush.msrb.mxu2 %v473_v63  ;;  %v548_v63 = vld [vmem:[%s1593_s15 + $0x30] sm:$0xff] }
  0x50   :  { %360 = vmatpush.msrb.mxu0 %v329_v0 }
  0x52   :  { %361 = vmatpush.msrb.mxu0 %v328_v2  ;;  %v472_v2 = vld [vmem:[%s1590_s13 + $0x68] sm:$0xff] }
  0x53   :  { %481 = vmatpush.msrb.mxu2 %v472_v2  ;;  %v545_v2 = vld [vmem:[%s1593_s15 + $0x18] sm:$0xff] }
  0xad   :  { %v128_v3 = vpop.f32.mrf.mxu0 }
  0xae   :  { %v151_v4 = vpop.f32.mrf.mxu1 }
  0xaf   :  { %v152_v6 = vadd.f32 %v151_v4, %v128_v3  ;;  %v327_v3 = vld [vmem:[%s1587_s9] sm:$0xff] }
  0xb0   :  { %362 = vmatpush.msrb.mxu0 %v327_v3 }
  0xb2   :  { %v190_v10 = vpop.f32.mrf.mxu2 }
  0xb3   :  { %v196_v11 = vadd.f32 %v190_v10, %v152_v6 }
  0xb5   :  { %v202_v12 = vadd.f32 %v792_v8, %v196_v11  ;;  %v131_v13 = vpop.f32.mrf.mxu0 }
  0xb6   :  { %v154_v14 = vpop.f32.mrf.mxu1 }
  0xb7   :  { %v766_v15 = vmul.f32 -1.442695, %v202_v12  ;;  %v155_v16 = vadd.f32 %v154_v14, %v131_v13 }
  0xb9   :  { %800 = vpow2.f32 %v766_v15 }
  0xba   :  { %v193_v17 = vpop.f32.mrf.mxu2 }
  0xbb   :  { %v197_v18 = vadd.f32 %v193_v17, %v155_v16 }
  0xbd   :  { %v203_v19 = vadd.f32 %v792_v8, %v197_v18 }
  0xbf   :  { %v801_v20 = vpop.eup %800  ;;  %v767_v21 = vmul.f32 -1.442695, %v203_v19 }
  0xc0   :  { %v210_v22 = vadd.f32 1.0, %v801_v20 }
  0xc1   :  { %802 = vpow2.f32 %v767_v21 }
  0xc2   :  { %804 = vrcp.f32 %v210_v22  ;;  %v223_v28 = vand.u32 2147483648, %v210_v22  ;;  %v221_v30 = vand.u32 2147483647, %v210_v22  ;;  %vm217_vm1 = vweird.f32 %v210_v22 }
  0xc4   :  { %v224_v33 = vor.u32 1.1754944e-38, %v223_v28  ;;  %vm222_vm3 = vcmp.eq.f32.partialorder %v221_v30, 8.507059e+37 }
  0xc7   :  { %v803_v23 = vpop.eup %802 }
  0xc8   :  { %v805_v24 = vpop.eup %804  ;;  %v211_v25 = vadd.f32 1.0, %v803_v23 }
  0xc9   :  { %v213_v26 = vmul.f32 %v805_v24, %v210_v22  ;;  %vm218_vm0 = vweird.f32 %v805_v24 }
  0xca   :  { %806 = vrcp.f32 %v211_v25  ;;  %vm219_vm2 = vmor %vm217_vm1, %vm218_vm0  ;;  %v238_v39 = vand.u32 2147483648, %v211_v25  ;;  %v236_v41 = vand.u32 2147483647, %v211_v25  ;;  %vm232_vm5 = vweird.f32 %v211_v25 }
  0xcb   :  { %v214_v27 = vsub.f32 1.0, %v213_v26 }
  0xcc   :  { %v239_v43 = vor.u32 1.1754944e-38, %v238_v39  ;;  %vm237_vm7 = vcmp.eq.f32.partialorder %v236_v41, 8.507059e+37  ;;  %v422_v39 = vld [vmem:[%s1589_s11 + $0x60] sm:$0xff]  ;;  %v420_v41 = vld [vmem:[%s1589_s11 + $0x50] sm:$0xff] }
  0xcd   :  { %v215_v29 = vmul.f32 %v805_v24, %v214_v27 }
  0xcf   :  { %v216_v31 = vadd.f32 %v805_v24, %v215_v29 }
  0xd0   :  { %v807_v32 = vpop.eup %806 }
  0xd1   :  { %v220_v34 = vsel %vm219_vm2, %v805_v24, %v216_v31  ;;  %v228_v35 = vmul.f32 %v807_v32, %v211_v25  ;;  %vm233_vm4 = vweird.f32 %v807_v32 }
  0xd2   :  { %v225_v36 = vsel %vm222_vm3, %v224_v33, %v220_v34  ;;  %vm234_vm6 = vmor %vm232_vm5, %vm233_vm4 }
  0xd3   :  { %v242_v37 = vmul.f32 %v225_v36, %v202_v12  ;;  %v229_v38 = vsub.f32 1.0, %v228_v35  ;;  %v425_v36 = vld [vmem:[%s1589_s11 + $0x78] sm:$0xff] }
  0xd4   :  { %430 = vmatpush.msrb.mxu1 %v425_v36 }
  0xd5   :  { %280 = vmatmul.f32.vlgmr.msra.gmra.mxu3 %v242_v37  ;;  %v230_v40 = vmul.f32 %v807_v32, %v229_v38  ;;  %v424_v37 = vld [vmem:[%s1589_s11 + $0x70] sm:$0xff]  ;;  %v423_v38 = vld [vmem:[%s1589_s11 + $0x68] sm:$0xff] }
  0xd6   :  { %431 = vmatpush.msrb.mxu1 %v424_v37 }
  0xd7   :  { %v231_v42 = vadd.f32 %v807_v32, %v230_v40  ;;  %v421_v40 = vld [vmem:[%s1589_s11 + $0x58] sm:$0xff] }
  0xd8   :  { %432 = vmatpush.msrb.mxu1 %v423_v38  ;;  %v461_v38 = vld [vmem:[%s1590_s13 + $0x10] sm:$0xff] }
  0xd9   :  { %v235_v44 = vsel %vm234_vm6, %v807_v32, %v231_v42  ;;  %v419_v42 = vld [vmem:[%s1589_s11 + $0x48] sm:$0xff] }
  0xda   :  { %v240_v45 = vsel %vm237_vm7, %v239_v43, %v235_v44  ;;  %433 = vmatpush.msrb.mxu1 %v422_v39  ;;  %v418_v43 = vld [vmem:[%s1589_s11 + $0x40] sm:$0xff]  ;;  %v417_v44 = vld [vmem:[%s1589_s11 + $0x38] sm:$0xff]  ;;  %v460_v39 = vld [vmem:[%s1590_s13 + $0x8] sm:$0xff] }
  0xdb   :  { %v243_v46 = vmul.f32 %v240_v45, %v203_v19  ;;  %v416_v45 = vld [vmem:[%s1589_s11 + $0x30] sm:$0xff] }
  0xdc   :  { %434 = vmatpush.msrb.mxu1 %v421_v40  ;;  %v459_v40 = vld [vmem:[%s1590_s13] sm:$0xff] }
  0xdd   :  { %283 = vmatmul.f32.gmra.mxu3 %v243_v46  ;;  %v415_v46 = vld [vmem:[%s1589_s11 + $0x28] sm:$0xff] }
  0xde   :  { %435 = vmatpush.msrb.mxu1 %v420_v41  ;;  %v795_v41 = vld [vmem:[%s1588_s12] ss:$0 sm:$0xff] }
  0xe0   :  { %436 = vmatpush.msrb.mxu1 %v419_v42 }
  0xe2   :  { %437 = vmatpush.msrb.mxu1 %v418_v43 }
  0xe4   :  { %438 = vmatpush.msrb.mxu1 %v417_v44 }
  0xe6   :  { %439 = vmatpush.msrb.mxu1 %v416_v45 }
  0xe8   :  { %440 = vmatpush.msrb.mxu1 %v415_v46 }
  0xea   :  { %441 = vmatpush.msrb.mxu1 %v414_v48 }
  0xec   :  { %442 = vmatpush.msrb.mxu1 %v413_v50 }
  0xee   :  { %443 = vmatpush.msrb.mxu1 %v412_v53 }
  0xf0   :  { %444 = vmatpush.msrb.mxu1 %v411_v55  ;;  %v556_v55 = vld [vmem:[%s1593_s15 + $0x70] sm:$0xff] }
  0xf2   :  { %445 = vmatpush.msrb.mxu1 %v410_v56  ;;  %v555_v56 = vld [vmem:[%s1593_s15 + $0x68] sm:$0xff] }
 0x158   :  { %v281_v4 = vpop.f32.mrf.mxu3 }
 0x159   :  { %v282_v5 = vadd.f32 %v793_v1, %v281_v4  ;;  %v471_v4 = vld [vmem:[%s1590_s13 + $0x60] sm:$0xff] }
 0x15a   :  { %482 = vmatpush.msrb.mxu2 %v471_v4  ;;  %v796_v4 = vld [vmem:[%s1591_s14] ss:$0 sm:$0xff] }
 0x15b   :  { %v768_v6 = vmul.f32 -1.442695, %v282_v5 }
 0x15d   :  { %808 = vpow2.f32 %v768_v6  ;;  %v469_v6 = vld [vmem:[%s1590_s13 + $0x50] sm:$0xff] }
 0x160   :  { %v284_v7 = vpop.f32.mrf.mxu3 }
 0x161   :  { %v285_v8 = vadd.f32 %v793_v1, %v284_v7 }
 0x163   :  { %v809_v9 = vpop.eup %808  ;;  %v769_v10 = vmul.f32 -1.442695, %v285_v8 }
 0x164   :  { %v293_v11 = vadd.f32 1.0, %v809_v9 }
 0x165   :  { %810 = vpow2.f32 %v769_v10 }
 0x166   :  { %812 = vrcp.f32 %v293_v11  ;;  %v306_v17 = vand.u32 2147483648, %v293_v11  ;;  %v304_v19 = vand.u32 2147483647, %v293_v11  ;;  %vm300_vm9 = vweird.f32 %v293_v11 }
 0x168   :  { %v307_v22 = vor.u32 1.1754944e-38, %v306_v17  ;;  %vm305_vm11 = vcmp.eq.f32.partialorder %v304_v19, 8.507059e+37 }
 0x16b   :  { %v811_v12 = vpop.eup %810 }
 0x16c   :  { %v813_v13 = vpop.eup %812  ;;  %v294_v14 = vadd.f32 1.0, %v811_v12  ;;  %v467_v12 = vld [vmem:[%s1590_s13 + $0x40] sm:$0xff] }
 0x16d   :  { %v296_v15 = vmul.f32 %v813_v13, %v293_v11  ;;  %vm301_vm8 = vweird.f32 %v813_v13 }
 0x16e   :  { %814 = vrcp.f32 %v294_v14  ;;  %vm302_vm10 = vmor %vm300_vm9, %vm301_vm8  ;;  %v321_v28 = vand.u32 2147483648, %v294_v14  ;;  %v319_v30 = vand.u32 2147483647, %v294_v14  ;;  %vm315_vm13 = vweird.f32 %v294_v14 }
 0x16f   :  { %v297_v16 = vsub.f32 1.0, %v296_v15 }
 0x170   :  { %v322_v32 = vor.u32 1.1754944e-38, %v321_v28  ;;  %vm320_vm15 = vcmp.eq.f32.partialorder %v319_v30, 8.507059e+37 }
 0x171   :  { %v298_v18 = vmul.f32 %v813_v13, %v297_v16 }
 0x173   :  { %v299_v20 = vadd.f32 %v813_v13, %v298_v18  ;;  %v465_v18 = vld [vmem:[%s1590_s13 + $0x30] sm:$0xff] }
 0x174   :  { %v815_v21 = vpop.eup %814 }
 0x175   :  { %v303_v23 = vsel %vm302_vm10, %v813_v13, %v299_v20  ;;  %v311_v24 = vmul.f32 %v815_v21, %v294_v14  ;;  %vm316_vm12 = vweird.f32 %v815_v21  ;;  %v466_v14 = vld [vmem:[%s1590_s13 + $0x38] sm:$0xff]  ;;  %v464_v20 = vld [vmem:[%s1590_s13 + $0x28] sm:$0xff] }
 0x176   :  { %v308_v25 = vsel %vm305_vm11, %v307_v22, %v303_v23  ;;  %vm317_vm14 = vmor %vm315_vm13, %vm316_vm12 }
 0x177   :  { %v325_v26 = vmul.f32 %v308_v25, %v282_v5  ;;  %v312_v27 = vsub.f32 1.0, %v311_v24  ;;  %v470_v5 = vld [vmem:[%s1590_s13 + $0x58] sm:$0xff]  ;;  %v463_v25 = vld [vmem:[%s1590_s13 + $0x20] sm:$0xff] }
 0x178   :  { %483 = vmatpush.msrb.mxu2 %v470_v5  ;;  %v543_v5 = vld [vmem:[%s1593_s15 + $0x8] sm:$0xff] }
 0x179   :  { %363 = vmatmul.f32.vlgmr.msrb.gmra.mxu0 %v325_v26  ;;  %v313_v29 = vmul.f32 %v815_v21, %v312_v27 }
 0x17a   :  { %484 = vmatpush.msrb.mxu2 %v469_v6  ;;  %v542_v6 = vld [vmem:[%s1593_s15] sm:$0xff] }
 0x17b   :  { %v314_v31 = vadd.f32 %v815_v21, %v313_v29  ;;  %v462_v29 = vld [vmem:[%s1590_s13 + $0x18] sm:$0xff] }
 0x17d   :  { %v318_v33 = vsel %vm317_vm14, %v815_v21, %v314_v31 }
 0x17e   :  { %v323_v34 = vsel %vm320_vm15, %v322_v32, %v318_v33 }
 0x17f   :  { %v326_v35 = vmul.f32 %v323_v34, %v285_v8  ;;  %v468_v8 = vld [vmem:[%s1590_s13 + $0x48] sm:$0xff] }
 0x180   :  { %485 = vmatpush.msrb.mxu2 %v468_v8 }
 0x181   :  { %366 = vmatmul.f32.gmra.mxu0 %v326_v35 }
 0x182   :  { %486 = vmatpush.msrb.mxu2 %v467_v12  ;;  %v620_v12 = vld [vmem:[%s1594_s18 + $0x78] sm:$0xff] }
 0x183   :  { %621 = vmatpush.msra.mxu0 %v620_v12 }
 0x184   :  { %487 = vmatpush.msrb.mxu2 %v466_v14  ;;  %v619_v14 = vld [vmem:[%s1594_s18 + $0x70] sm:$0xff] }
 0x185   :  { %622 = vmatpush.msra.mxu0 %v619_v14 }
 0x186   :  { %488 = vmatpush.msrb.mxu2 %v465_v18  ;;  %v618_v18 = vld [vmem:[%s1594_s18 + $0x68] sm:$0xff] }
 0x187   :  { %623 = vmatpush.msra.mxu0 %v618_v18 }
 0x188   :  { %489 = vmatpush.msrb.mxu2 %v464_v20 }
 0x18a   :  { %490 = vmatpush.msrb.mxu2 %v463_v25  ;;  %v615_v25 = vld [vmem:[%s1594_s18 + $0x50] sm:$0xff] }
 0x18c   :  { %491 = vmatpush.msrb.mxu2 %v462_v29  ;;  %v598_v29 = vld [vmem:[%s1595_s17 + $0x48] sm:$0xff] }
 0x18e   :  { %492 = vmatpush.msrb.mxu2 %v461_v38 }
 0x190   :  { %493 = vmatpush.msrb.mxu2 %v460_v39 }
 0x192   :  { %494 = vmatpush.msrb.mxu2 %v459_v40 }
 0x1f6   :  { %v364_v57 = vpop.f32.mrf.mxu0 }
 0x1f7   :  { %v365_v58 = vadd.f32 %v794_v54, %v364_v57  ;;  %v554_v57 = vld [vmem:[%s1593_s15 + $0x60] sm:$0xff] }
 0x1f9   :  { %v770_v59 = vmul.f32 -1.442695, %v365_v58 }
 0x1fb   :  { %816 = vpow2.f32 %v770_v59  ;;  %v552_v59 = vld [vmem:[%s1593_s15 + $0x50] sm:$0xff] }
 0x1fe   :  { %v367_v60 = vpop.f32.mrf.mxu0 }
 0x1ff   :  { %v1287_v61 = vadd.f32 %v794_v54, %v367_v60  ;;  %v557_v54 = vld [vmem:[%s1593_s15 + $0x78] sm:$0xff]  ;;  %v551_v60 = vld [vmem:[%s1593_s15 + $0x48] sm:$0xff] }
 0x200   :  { %562 = vmatpush.msrb.mxu3 %v557_v54  ;;  %v609_v54 = vld [vmem:[%s1594_s18 + $0x20] sm:$0xff] }
 0x201   :  { %v817_v0 = vpop.eup %816  ;;  %v771_v1 = vmul.f32 -1.442695, %v1287_v61 }
 0x202   :  { %v376_v3 = vadd.f32 1.0, %v817_v0  ;;  %563 = vmatpush.msrb.mxu3 %v556_v55  ;;  %v547_v0 = vld [vmem:[%s1593_s15 + $0x28] sm:$0xff]  ;;  %v593_v55 = vld [vmem:[%s1595_s17 + $0x20] sm:$0xff] }
 0x203   :  { %818 = vpow2.f32 %v771_v1  ;;  %v546_v1 = vld [vmem:[%s1593_s15 + $0x20] sm:$0xff] }
 0x204   :  { %820 = vrcp.f32 %v376_v3  ;;  %v389_v15 = vand.u32 2147483648, %v376_v3  ;;  %v387_v17 = vand.u32 2147483647, %v376_v3  ;;  %vm383_vm1 = vweird.f32 %v376_v3  ;;  %564 = vmatpush.msrb.mxu3 %v555_v56 }
 0x206   :  { %v390_v22 = vor.u32 1.1754944e-38, %v389_v15  ;;  %vm388_vm3 = vcmp.eq.f32.partialorder %v387_v17, 8.507059e+37  ;;  %565 = vmatpush.msrb.mxu3 %v554_v57  ;;  %v603_v15 = vld [vmem:[%s1595_s17 + $0x70] sm:$0xff] }
 0x209   :  { %v819_v7 = vpop.eup %818 }
 0x20a   :  { %v821_v9 = vpop.eup %820  ;;  %v377_v10 = vadd.f32 1.0, %v819_v7 }
 0x20b   :  { %v379_v11 = vmul.f32 %v821_v9, %v376_v3  ;;  %vm384_vm0 = vweird.f32 %v821_v9  ;;  %v544_v3 = vld [vmem:[%s1593_s15 + $0x10] sm:$0xff] }
 0x20c   :  { %822 = vrcp.f32 %v377_v10  ;;  %vm385_vm2 = vmor %vm383_vm1, %vm384_vm0  ;;  %v404_v30 = vand.u32 2147483648, %v377_v10  ;;  %v402_v32 = vand.u32 2147483647, %v377_v10  ;;  %vm398_vm5 = vweird.f32 %v377_v10 }
 0x20d   :  { %v380_v13 = vsub.f32 1.0, %v379_v11 }
 0x20e   :  { %v405_v34 = vor.u32 1.1754944e-38, %v404_v30  ;;  %vm403_vm7 = vcmp.eq.f32.partialorder %v402_v32, 8.507059e+37 }
 0x20f   :  { %v381_v16 = vmul.f32 %v821_v9, %v380_v13  ;;  %v604_v13 = vld [vmem:[%s1595_s17 + $0x78] sm:$0xff] }
 0x210   :  { %644 = vmatpush.msra.mxu1 %v604_v13 }
 0x211   :  { %v382_v19 = vadd.f32 %v821_v9, %v381_v16 }
 0x212   :  { %v823_v21 = vpop.eup %822  ;;  %645 = vmatpush.msra.mxu1 %v603_v15 }
 0x213   :  { %v386_v23 = vsel %vm385_vm2, %v821_v9, %v382_v19  ;;  %v394_v24 = vmul.f32 %v823_v21, %v377_v10  ;;  %vm399_vm4 = vweird.f32 %v823_v21  ;;  %v602_v19 = vld [vmem:[%s1595_s17 + $0x68] sm:$0xff] }
 0x214   :  { %v391_v26 = vsel %vm388_vm3, %v390_v22, %v386_v23  ;;  %vm400_vm6 = vmor %vm398_vm5, %vm399_vm4  ;;  %v601_v22 = vld [vmem:[%s1595_s17 + $0x60] sm:$0xff]  ;;  %646 = vmatpush.msra.mxu1 %v602_v19  ;;  %v616_v23 = vld [vmem:[%s1594_s18 + $0x58] sm:$0xff] }
 0x215   :  { %v408_v27 = vmul.f32 %v391_v26, %v365_v58  ;;  %v395_v28 = vsub.f32 1.0, %v394_v24  ;;  %v553_v58 = vld [vmem:[%s1593_s15 + $0x58] sm:$0xff]  ;;  %v599_v26 = vld [vmem:[%s1595_s17 + $0x50] sm:$0xff] }
 0x216   :  { %566 = vmatpush.msrb.mxu3 %v553_v58  ;;  %v600_v24 = vld [vmem:[%s1595_s17 + $0x58] sm:$0xff]  ;;  %647 = vmatpush.msra.mxu1 %v601_v22  ;;  %v723_v19 = vld [vmem:[%s1599_s20 + $0x50] sm:$0xff] }
 0x217   :  { %446 = vmatmul.f32.vlgmr.msrb.gmra.mxu1 %v408_v27  ;;  %v396_v31 = vmul.f32 %v823_v21, %v395_v28  ;;  %v614_v28 = vld [vmem:[%s1594_s18 + $0x48] sm:$0xff]  ;;  %v720_v22 = vld [vmem:[%s1599_s20 + $0x38] sm:$0xff] }
 0x218   :  { %567 = vmatpush.msrb.mxu3 %v552_v59  ;;  %648 = vmatpush.msra.mxu1 %v600_v24  ;;  %v608_v59 = vld [vmem:[%s1594_s18 + $0x18] sm:$0xff]  ;;  %v718_v24 = vld [vmem:[%s1599_s20 + $0x28] sm:$0xff] }
 0x219   :  { %v397_v33 = vadd.f32 %v823_v21, %v396_v31 }
 0x21a   :  { %568 = vmatpush.msrb.mxu3 %v551_v60  ;;  %649 = vmatpush.msra.mxu1 %v599_v26  ;;  %v592_v60 = vld [vmem:[%s1595_s17 + $0x18] sm:$0xff] }
 0x21b   :  { %v401_v35 = vsel %vm400_vm6, %v823_v21, %v397_v33  ;;  %v617_v21 = vld [vmem:[%s1594_s18 + $0x60] sm:$0xff]  ;;  %v716_v26 = vld [vmem:[%s1599_s20 + $0x18] sm:$0xff] }
 0x21c   :  { %v406_v36 = vsel %vm403_vm7, %v405_v34, %v401_v35  ;;  %624 = vmatpush.msra.mxu0 %v617_v21  ;;  %v613_v33 = vld [vmem:[%s1594_s18 + $0x40] sm:$0xff]  ;;  %650 = vmatpush.msra.mxu1 %v598_v29 }
 0x21d   :  { %v409_v37 = vmul.f32 %v406_v36, %v1287_v61  ;;  %v550_v61 = vld [vmem:[%s1593_s15 + $0x40] sm:$0xff]  ;;  %v612_v36 = vld [vmem:[%s1594_s18 + $0x38] sm:$0xff] }
 0x21e   :  { %569 = vmatpush.msrb.mxu3 %v550_v61  ;;  %625 = vmatpush.msra.mxu0 %v616_v23  ;;  %v597_v34 = vld [vmem:[%s1595_s17 + $0x40] sm:$0xff] }
 0x21f   :  { %449 = vmatmul.f32.gmra.mxu1 %v409_v37  ;;  %v596_v37 = vld [vmem:[%s1595_s17 + $0x38] sm:$0xff]  ;;  %v798_v29 = vld [vmem:[%s1597_s19] ss:$0 sm:$0xff] }
 0x220   :  { %570 = vmatpush.msrb.mxu3 %v549_v62  ;;  %626 = vmatpush.msra.mxu0 %v615_v25 }
 0x221   :  { %651 = vmatpush.msra.mxu1 %v597_v34 }
 0x222   :  { %571 = vmatpush.msrb.mxu3 %v548_v63  ;;  %627 = vmatpush.msra.mxu0 %v614_v28 }
 0x223   :  { %652 = vmatpush.msra.mxu1 %v596_v37 }
 0x224   :  { %572 = vmatpush.msrb.mxu3 %v547_v0  ;;  %628 = vmatpush.msra.mxu0 %v613_v33 }
 0x226   :  { %573 = vmatpush.msrb.mxu3 %v546_v1  ;;  %629 = vmatpush.msra.mxu0 %v612_v36 }
 0x228   :  { %574 = vmatpush.msrb.mxu3 %v545_v2 }
 0x22a   :  { %575 = vmatpush.msrb.mxu3 %v544_v3 }
 0x22c   :  { %576 = vmatpush.msrb.mxu3 %v543_v5  ;;  %v607_v5 = vld [vmem:[%s1594_s18 + $0x10] sm:$0xff] }
 0x22e   :  { %577 = vmatpush.msrb.mxu3 %v542_v6  ;;  %v591_v6 = vld [vmem:[%s1595_s17 + $0x10] sm:$0xff] }
 0x230   :  { %776 = vmatpush.msra.mxu3 %v620_v12 }
 0x232   :  { %777 = vmatpush.msra.mxu3 %v619_v14 }
 0x234   :  { %778 = vmatpush.msra.mxu3 %v618_v18  ;;  %v724_v18 = vld [vmem:[%s1599_s20 + $0x58] sm:$0xff] }
 0x236   :  { %779 = vmatpush.msra.mxu3 %v617_v21  ;;  %v721_v21 = vld [vmem:[%s1599_s20 + $0x40] sm:$0xff] }
 0x238   :  { %780 = vmatpush.msra.mxu3 %v616_v23  ;;  %v719_v23 = vld [vmem:[%s1599_s20 + $0x30] sm:$0xff] }
 0x23a   :  { %781 = vmatpush.msra.mxu3 %v615_v25  ;;  %v717_v25 = vld [vmem:[%s1599_s20 + $0x20] sm:$0xff] }
 0x23c   :  { %782 = vmatpush.msra.mxu3 %v614_v28 }
 0x23e   :  { %783 = vmatpush.msra.mxu3 %v613_v33  ;;  %v713_v33 = vld [vmem:[%s1599_s20] sm:$0xff] }
 0x240   :  { %784 = vmatpush.msra.mxu3 %v612_v36 }
 0x294   :  { %v447_v42 = vpop.f32.mrf.mxu1 }
 0x295   :  { %v448_v43 = vadd.f32 %v795_v41, %v447_v42  ;;  %v595_v42 = vld [vmem:[%s1595_s17 + $0x30] sm:$0xff] }
 0x296   :  { %653 = vmatpush.msra.mxu1 %v595_v42 }
 0x297   :  { %v455_v44 = vmul.f32 0.01, %v448_v43  ;;  %vm453_vm8 = vcmp.ge.f32.partialorder %v448_v43, 0.0 }
 0x299   :  { %v457_v45 = vsel %vm453_vm8, %v448_v43, %v455_v44  ;;  %v610_v44 = vld [vmem:[%s1594_s18 + $0x28] sm:$0xff] }
 0x29a   :  { %495 = vmatmul.f32.vlgmr.msrb.gmra.mxu2 %v457_v45  ;;  %v594_v45 = vld [vmem:[%s1595_s17 + $0x28] sm:$0xff] }
 0x29b   :  { %654 = vmatpush.msra.mxu1 %v594_v45 }
 0x29c   :  { %v450_v46 = vpop.f32.mrf.mxu1 }
 0x29d   :  { %v451_v48 = vadd.f32 %v795_v41, %v450_v46  ;;  %v611_v41 = vld [vmem:[%s1594_s18 + $0x30] sm:$0xff]  ;;  %655 = vmatpush.msra.mxu1 %v593_v55 }
 0x29e   :  { %630 = vmatpush.msra.mxu0 %v611_v41  ;;  %785 = vmatpush.msra.mxu3 %v611_v41 }
 0x29f   :  { %vm454_vm9 = vcmp.ge.f32.partialorder %v451_v48, 0.0  ;;  %v456_v50 = vmul.f32 0.01, %v451_v48  ;;  %656 = vmatpush.msra.mxu1 %v592_v60 }
 0x2a0   :  { %631 = vmatpush.msra.mxu0 %v610_v44  ;;  %786 = vmatpush.msra.mxu3 %v610_v44 }
 0x2a1   :  { %v458_v53 = vsel %vm454_vm9, %v451_v48, %v456_v50  ;;  %657 = vmatpush.msra.mxu1 %v591_v6 }
 0x2a2   :  { %498 = vmatmul.f32.gmra.mxu2 %v458_v53  ;;  %632 = vmatpush.msra.mxu0 %v609_v54 }
 0x2a3   :  { %787 = vmatpush.msra.mxu3 %v609_v54 }
 0x2a4   :  { %633 = vmatpush.msra.mxu0 %v608_v59 }
 0x2a5   :  { %788 = vmatpush.msra.mxu3 %v608_v59 }
 0x2a6   :  { %634 = vmatpush.msra.mxu0 %v607_v5 }
 0x2a7   :  { %789 = vmatpush.msra.mxu3 %v607_v5 }
 0x31d   :  { %v496_v7 = vpop.f32.mrf.mxu2 }
 0x31e   :  { %v1393_v8 = vadd.f32 %v796_v4, %v496_v7  ;;  %v606_v7 = vld [vmem:[%s1594_s18 + $0x8] sm:$0xff] }
 0x31f   :  { %635 = vmatpush.msra.mxu0 %v606_v7  ;;  %790 = vmatpush.msra.mxu3 %v606_v7  ;;  %v799_v7 = vld [vmem:[%s1598_s21] ss:$0 sm:$0xff] }
 0x320   :  { %v772_v9 = vmul.f32 -1.442695, %v1393_v8 }
 0x322   :  { %824 = vpow2.f32 %v772_v9  ;;  %v605_v9 = vld [vmem:[%s1594_s18] sm:$0xff] }
 0x323   :  { %636 = vmatpush.msra.mxu0 %v605_v9  ;;  %791 = vmatpush.msra.mxu3 %v605_v9 }
 0x325   :  { %v499_v10 = vpop.f32.mrf.mxu2 }
 0x326   :  { %v1396_v11 = vadd.f32 %v796_v4, %v499_v10  ;;  %v589_v10 = vld [vmem:[%s1595_s17] sm:$0xff] }
 0x328   :  { %v825_v16 = vpop.eup %824  ;;  %v773_v17 = vmul.f32 -1.442695, %v1396_v11 }
 0x329   :  { %v508_v20 = vadd.f32 1.0, %v825_v16 }
 0x32a   :  { %826 = vpow2.f32 %v773_v17  ;;  %v726_v17 = vld [vmem:[%s1599_s20 + $0x68] sm:$0xff] }
 0x32b   :  { %828 = vrcp.f32 %v508_v20  ;;  %v521_v38 = vand.u32 2147483648, %v508_v20  ;;  %v519_v40 = vand.u32 2147483647, %v508_v20  ;;  %vm515_vm11 = vweird.f32 %v508_v20 }
 0x32d   :  { %v522_v48 = vor.u32 1.1754944e-38, %v521_v38  ;;  %vm520_vm13 = vcmp.eq.f32.partialorder %v519_v40, 8.507059e+37 }
 0x330   :  { %v827_v27 = vpop.eup %826 }
 0x331   :  { %v829_v30 = vpop.eup %828  ;;  %v1441_v31 = vadd.f32 1.0, %v827_v27  ;;  %v715_v27 = vld [vmem:[%s1599_s20 + $0x10] sm:$0xff] }
 0x332   :  { %v511_v32 = vmul.f32 %v829_v30, %v508_v20  ;;  %vm516_vm10 = vweird.f32 %v829_v30  ;;  %v722_v20 = vld [vmem:[%s1599_s20 + $0x48] sm:$0xff] }
 0x333   :  { %830 = vrcp.f32 %v1441_v31  ;;  %vm517_vm12 = vmor %vm515_vm11, %vm516_vm10  ;;  %v536_v61 = vand.u32 2147483648, %v1441_v31  ;;  %v534_v63 = vand.u32 2147483647, %v1441_v31  ;;  %vm530_vm15 = vweird.f32 %v1441_v31 }
 0x334   :  { %v512_v35 = vsub.f32 1.0, %v511_v32 }
 0x335   :  { %v537_v1 = vor.u32 1.1754944e-38, %v536_v61  ;;  %vm535_vm1 = vcmp.eq.f32.partialorder %v534_v63, 8.507059e+37 }
 0x336   :  { %v513_v39 = vmul.f32 %v829_v30, %v512_v35 }
 0x338   :  { %v514_v43 = vadd.f32 %v829_v30, %v513_v39 }
 0x339   :  { %v831_v46 = vpop.eup %830 }
 0x33a   :  { %v518_v50 = vsel %vm517_vm12, %v829_v30, %v514_v43  ;;  %v526_v53 = vmul.f32 %v831_v46, %v1441_v31  ;;  %vm531_vm14 = vweird.f32 %v831_v46  ;;  %v714_v30 = vld [vmem:[%s1599_s20 + $0x8] sm:$0xff] }
 0x33b   :  { %v523_v56 = vsel %vm520_vm13, %v522_v48, %v518_v50  ;;  %vm532_vm0 = vmor %vm530_vm15, %vm531_vm14 }
 0x33c   :  { %v540_v57 = vmul.f32 %v523_v56, %v1393_v8  ;;  %v527_v58 = vsub.f32 1.0, %v526_v53  ;;  %v590_v8 = vld [vmem:[%s1595_s17 + $0x8] sm:$0xff] }
 0x33d   :  { %658 = vmatpush.msra.mxu1 %v590_v8 }
 0x33e   :  { %578 = vmatmul.f32.vlgmr.msrb.gmra.mxu3 %v540_v57  ;;  %v528_v62 = vmul.f32 %v831_v46, %v527_v58 }
 0x33f   :  { %659 = vmatpush.msra.mxu1 %v589_v10 }
 0x340   :  { %v529_v0 = vadd.f32 %v831_v46, %v528_v62  ;;  %660 = vmatmul.f32.vlgmr.msra.gmra.mxu1 %v1112_v49 }
 0x342   :  { %v533_v2 = vsel %vm532_vm0, %v831_v46, %v529_v0 }
 0x343   :  { %v538_v3 = vsel %vm535_vm1, %v537_v1, %v533_v2 }
 0x344   :  { %v541_v4 = vmul.f32 %v538_v3, %v1396_v11  ;;  %v797_v11 = vld [vmem:[%s1592_s16] ss:$0 sm:$0xff] }
 0x346   :  { %581 = vmatmul.f32.gmra.mxu3 %v541_v4 }
 0x348   :  { %663 = vmatmul.f32.gmra.mxu1 %v1127_v52  ;;  %v728_v52 = vld [vmem:[%s1599_s20 + $0x78] sm:$0xff] }
 0x349   :  { %733 = vmatpush.msra.mxu2 %v728_v52 }
 0x3bd   :  { %v661_v28 = vpop.f32.mrf.mxu1 }
 0x3c1   :  { %v579_v12 = vpop.f32.mrf.mxu3 }
 0x3c2   :  { %v580_v13 = vadd.f32 %v797_v11, %v579_v12 }
 0x3c4   :  { %v585_v14 = vadd.f32 %v580_v13, %v1104_v47  ;;  %v727_v47 = vld [vmem:[%s1599_s20 + $0x70] sm:$0xff] }
 0x3c5   :  { %734 = vmatpush.msra.mxu2 %v727_v47  ;;  %v664_v36 = vpop.f32.mrf.mxu1 }
 0x3c6   :  { %587 = vst [vmem:[%s1596_s22] sm:$0xff] %v585_v14  ;;  %637 = vmatmul.f32.vlgmr.msra.gmra.mxu0 %v585_v14 }
 0x3c7   :  { %735 = vmatpush.msra.mxu2 %v726_v17 }
 0x3c9   :  { %v582_v15 = vpop.f32.mrf.mxu3 }
 0x3ca   :  { %v583_v16 = vadd.f32 %v797_v11, %v582_v15 }
 0x3cc   :  { %v586_v49 = vadd.f32 %v583_v16, %v1122_v51  ;;  %v725_v51 = vld [vmem:[%s1599_s20 + $0x60] sm:$0xff] }
 0x3cd   :  { %736 = vmatpush.msra.mxu2 %v725_v51 }
 0x3ce   :  { %588 = vst [vmem:[%s1596_s22 + $0x8] sm:$0xff] %v586_v49  ;;  %640 = vmatmul.f32.vlgmr.msra.gmra.mxu3 %v586_v49 }
 0x3cf   :  { %737 = vmatpush.msra.mxu2 %v724_v18 }
 0x3d1   :  { %738 = vmatpush.msra.mxu2 %v723_v19 }
 0x3d3   :  { %739 = vmatpush.msra.mxu2 %v722_v20 }
 0x3d5   :  { %740 = vmatpush.msra.mxu2 %v721_v21 }
 0x3d7   :  { %741 = vmatpush.msra.mxu2 %v720_v22 }
 0x3d9   :  { %742 = vmatpush.msra.mxu2 %v719_v23 }
 0x3db   :  { %743 = vmatpush.msra.mxu2 %v718_v24 }
 0x3dd   :  { %744 = vmatpush.msra.mxu2 %v717_v25 }
 0x3df   :  { %745 = vmatpush.msra.mxu2 %v716_v26 }
 0x3e1   :  { %746 = vmatpush.msra.mxu2 %v715_v27 }
 0x3e3   :  { %747 = vmatpush.msra.mxu2 %v714_v30 }
 0x3e5   :  { %748 = vmatpush.msra.mxu2 %v713_v33 }
 0x443   :  { %v638_v31 = vpop.f32.mrf.mxu0 }
 0x444   :  { %v662_v32 = vadd.f32 %v661_v28, %v638_v31 }
 0x446   :  { %v671_v34 = vadd.f32 %v798_v29, %v662_v32 }
 0x448   :  { %v774_v35 = vmul.f32 -1.442695, %v671_v34 }
 0x44a   :  { %832 = vpow2.f32 %v774_v35 }
 0x450   :  { %v833_v37 = vpop.eup %832 }
 0x451   :  { %v679_v38 = vadd.f32 1.0, %v833_v37  ;;  %v641_v39 = vpop.f32.mrf.mxu3 }
 0x452   :  { %v665_v40 = vadd.f32 %v664_v36, %v641_v39 }
 0x453   :  { %834 = vrcp.f32 %v679_v38  ;;  %v692_v46 = vand.u32 2147483648, %v679_v38  ;;  %v690_v53 = vand.u32 2147483647, %v679_v38  ;;  %vm686_vm3 = vweird.f32 %v679_v38 }
 0x454   :  { %v672_v41 = vadd.f32 %v798_v29, %v665_v40 }
 0x455   :  { %v693_v56 = vor.u32 1.1754944e-38, %v692_v46  ;;  %vm691_vm5 = vcmp.eq.f32.partialorder %v690_v53, 8.507059e+37 }
 0x456   :  { %v775_v42 = vmul.f32 -1.442695, %v672_v41 }
 0x458   :  { %836 = vpow2.f32 %v775_v42 }
 0x459   :  { %v835_v43 = vpop.eup %834 }
 0x45a   :  { %v682_v44 = vmul.f32 %v835_v43, %v679_v38  ;;  %vm687_vm2 = vweird.f32 %v835_v43 }
 0x45b   :  { %vm688_vm4 = vmor %vm686_vm3, %vm687_vm2 }
 0x45c   :  { %v683_v45 = vsub.f32 1.0, %v682_v44 }
 0x45e   :  { %v837_v48 = vpop.eup %836  ;;  %v684_v50 = vmul.f32 %v835_v43, %v683_v45 }
 0x45f   :  { %v680_v54 = vadd.f32 1.0, %v837_v48 }
 0x460   :  { %v685_v55 = vadd.f32 %v835_v43, %v684_v50 }
 0x461   :  { %838 = vrcp.f32 %v680_v54  ;;  %v707_v63 = vand.u32 2147483648, %v680_v54  ;;  %v705_v1 = vand.u32 2147483647, %v680_v54  ;;  %vm701_vm7 = vweird.f32 %v680_v54 }
 0x462   :  { %v689_v57 = vsel %vm688_vm4, %v835_v43, %v685_v55 }
 0x463   :  { %v694_v58 = vsel %vm691_vm5, %v693_v56, %v689_v57  ;;  %v708_v3 = vor.u32 1.1754944e-38, %v707_v63  ;;  %vm706_vm9 = vcmp.eq.f32.partialorder %v705_v1, 8.507059e+37 }
 0x464   :  { %v711_v59 = vmul.f32 %v694_v58, %v671_v34 }
 0x466   :  { %749 = vmatmul.f32.vlgmr.msra.gmra.mxu2 %v711_v59 }
 0x467   :  { %v839_v60 = vpop.eup %838 }
 0x468   :  { %v697_v61 = vmul.f32 %v839_v60, %v680_v54  ;;  %vm702_vm6 = vweird.f32 %v839_v60 }
 0x469   :  { %vm703_vm8 = vmor %vm701_vm7, %vm702_vm6 }
 0x46a   :  { %v698_v62 = vsub.f32 1.0, %v697_v61 }
 0x46c   :  { %v699_v0 = vmul.f32 %v839_v60, %v698_v62 }
 0x46e   :  { %v700_v2 = vadd.f32 %v839_v60, %v699_v0 }
 0x470   :  { %v704_v4 = vsel %vm703_vm8, %v839_v60, %v700_v2 }
 0x471   :  { %v709_v5 = vsel %vm706_vm9, %v708_v3, %v704_v4 }
 0x472   :  { %v712_v6 = vmul.f32 %v709_v5, %v672_v41 }
 0x474   :  { %752 = vmatmul.f32.gmra.mxu2 %v712_v6 }
 0x4e9   :  { %v750_v8 = vpop.f32.mrf.mxu2 }
 0x4ea   :  { %v751_v9 = vadd.f32 %v799_v7, %v750_v8 }
 0x4ec   :  { %756 = vst [vmem:[%s1600_s23] sm:$0xff] %v751_v9 }
 0x4f7   :  { %v753_v10 = vpop.f32.mrf.mxu2 }
 0x4f8   :  { %v754_v11 = vadd.f32 %v799_v7, %v753_v10 }
 0x4fa   :  { %757 = vst [vmem:[%s1600_s23 + $0x8] sm:$0xff] %v754_v11 }

// kernel: edge_extraction_forward.3
= control target key start
LH: loop header
LB: loop body
LE: loop exit
PB: predicated region body
PF: predicated region fallthrough
CT: control target
= control target key end

     0   :  { %s1457_s24 = smov [#allocation3]   ;;  %s1785_s0 = inlined_call_operand.vmem [shape: s32[6], index: 0, kind: input, shape index: {}]   ;;  %s1786_s1 = inlined_call_operand.vmem [shape: f32[48,128], index: 1, kind: input, shape index: {}]   ;;  %s1787_s2 = inlined_call_operand.vmem [shape: f32[48,128], index: 2, kind: input, shape index: {}]   ;;  %s1788_s3 = inlined_call_operand.vmem [shape: f32[48,128], index: 3, kind: input, shape index: {}]   ;;  %s1789_s4 = inlined_call_operand.vmem [shape: f32[4,128,128], index: 4, kind: input, shape index: {}]   ;;  %s1790_s5 = inlined_call_operand.vmem [shape: f32[4,128,128], index: 5, kind: input, shape index: {}]   ;;  %s1791_s6 = inlined_call_operand.vmem [shape: f32[4,128,128], index: 6, kind: input, shape index: {}]   ;;  %s1792_s7 = inlined_call_operand.vmem [shape: f32[4,1,128], index: 7, kind: input, shape index: {}]   ;;  %s1793_s8 = inlined_call_operand.vmem [shape: f32[4,128,128], index: 8, kind: input, shape index: {}]   ;;  %s1794_s9 = inlined_call_operand.vmem [shape: f32[4,1,128], index: 9, kind: input, shape index: {}]   ;;  %s1795_s10 = inlined_call_operand.vmem [shape: f32[4,128,128], index: 10, kind: input, shape index: {}]   ;;  %s1796_s11 = inlined_call_operand.vmem [shape: f32[4,1,128], index: 11, kind: input, shape index: {}]   ;;  %s1797_s12 = inlined_call_operand.vmem [shape: f32[4,128,128], index: 12, kind: input, shape index: {}]   ;;  %s1798_s13 = inlined_call_operand.vmem [shape: f32[4,1,128], index: 13, kind: input, shape index: {}]   ;;  %s1799_s14 = inlined_call_operand.vmem [shape: f32[4,128,128], index: 14, kind: input, shape index: {}]   ;;  %s1800_s15 = inlined_call_operand.vmem [shape: f32[4,1,128], index: 15, kind: input, shape index: {}]   ;;  %s1801_s16 = inlined_call_operand.vmem [shape: f32[48,128], index: 16, kind: output, shape index: {}]  }
   0x1   :  { %1802 = sst [smem:[#allocation5_spill]] %s1785_s0 }
   0x2   :  { %1803 = sst [smem:[#allocation6_spill]] %s1795_s10 }
   0x3   :  { %s1804_s23 = sld [smem:[#allocation5_spill]] }
   0x9   :  { %s22_s10 = sshll.u32 %s1804_s23, 4  ;;  %s23_s10 = int_to_ptr.vmem [resolvable:$true] %s22_s10 }
   0xa   :  { %25 = dma.vmem_to_smem %s23_s10, 16, %s1457_s24, [#allocation2] }
   0xb   :  { %1451 = dma.done.wait [#allocation2], 16 }
   0xc   :  { %1452 = vsyncadd [#allocation2], 4294967280 }
   0xd   :  { %28 = sfence }
   0xe   :  { %s1546_s25 = smov 0  }
   0xf LB: > { %s1552_s26 = sadd.s32 4294967295, %s1455_s25   ;;  %p1378_p0 = scmp.ge.s32.totalorder %s1455_s25, 1  ;;  %s1455_s25 = sphi %s1546_s25, %s34_s25  }
  0x10   : > { %p621_p1 = scmp.lt.s32.totalorder %s1455_s25, 7 }
  0x12   : > { %p622_p2 = pnand %p1378_p0, %p621_p1 }
  0x13   : > { %s763_s10 = sld [smem:[#allocation3 + %s1552_s26]] (!%p622_p2)  ;;  %p737_p6 = scmp.lt.s32.totalorder (!%p622_p2), %s1552_s26, 5 }
  0x14   : > { %625 = sbr.rel (%p622_p2) target bundleno = 816 (0x330), region = 80  ;;  %s756_s27 = sld [smem:[#allocation3 + %s1552_s26]] (!%p622_p2) }
  0x15   : > { %s749_s28 = sld [smem:[#allocation3 + %s1552_s26]] (!%p622_p2) }
  0x16   : > { %s782_s30 = sld [smem:[#allocation3 + %s1552_s26]] (!%p622_p2) }
  0x17   : > { %s775_s20 = sld [smem:[#allocation3 + %s1552_s26]] (!%p622_p2) }
  0x19   : > { %p764_p3 = scmp.lt.s32.totalorder %s763_s10, 3 }
  0x1a   : > { %p757_p4 = scmp.lt.s32.totalorder %s756_s27, 3 }
  0x1b   : > { %s1807_s10 = smov (!%p764_p3, %s763_s10), 3  ;;  %p750_p5 = scmp.lt.s32.totalorder %s749_s28, 3 }
  0x1c   : > { %s1809_s27 = smov (!%p757_p4, %s756_s27), 3  ;;  %s1404_s29 = sshll.u32 %s1807_s10, 7 }
  0x1d   : > { %s1562_s17 = scalar_lea.vmem %s1791_s6, %s1404_s29  ;;  %s1403_s18 = sshll.u32 %s1809_s27, 7 }
  0x1e   : > { %v917_v0 = vld [vmem:[%s1562_s17 + $0x78] sm:$0xff]  ;;  %v916_v1 = vld [vmem:[%s1562_s17 + $0x70] sm:$0xff]  ;;  %s1569_s21 = scalar_lea.vmem %s1790_s5, %s1403_s18  ;;  %s1811_s28 = smov (!%p750_p5, %s749_s28), 3  ;;  %v915_v4 = vld [vmem:[%s1562_s17 + $0x68] sm:$0xff] }
  0x1f   : > { %918 = vmatpush.msra.mxu2 %v917_v0  ;;  %v860_v2 = vld [vmem:[%s1569_s21 + $0x78] sm:$0xff]  ;;  %v859_v3 = vld [vmem:[%s1569_s21 + $0x70] sm:$0xff]  ;;  %s1402_s22 = sshll.u32 %s1811_s28, 7  ;;  %v858_v5 = vld [vmem:[%s1569_s21 + $0x68] sm:$0xff]  ;;  %s770_s18 = sld [smem:[#allocation3 + %s1552_s26]] }
  0x20   : > { %861 = vmatpush.msra.mxu0 %v860_v2  ;;  %s1578_s10 = scalar_lea.vmem %s1789_s4, %s1402_s22  ;;  %v914_v6 = vld [vmem:[%s1562_s17 + $0x60] sm:$0xff]  ;;  %v913_v10 = vld [vmem:[%s1562_s17 + $0x58] sm:$0xff]  ;;  %v912_v13 = vld [vmem:[%s1562_s17 + $0x50] sm:$0xff]  ;;  %p783_p8 = scmp.lt.s32.totalorder %s782_s30, 3 }
  0x21   : > { %919 = vmatpush.msra.mxu2 %v916_v1  ;;  %v843_v7 = vld [vmem:[%s1578_s10 + $0x78] sm:$0xff]  ;;  %v842_v8 = vld [vmem:[%s1578_s10 + $0x70] sm:$0xff]  ;;  %v857_v9 = vld [vmem:[%s1569_s21 + $0x60] sm:$0xff]  ;;  %s738_s27 = scalar_select %p737_p6, %s1552_s26, 5 }
  0x22   : > { %862 = vmatpush.msra.mxu0 %v859_v3  ;;  %881 = vmatpush.msra.mxu1 %v843_v7  ;;  %v841_v11 = vld [vmem:[%s1578_s10 + $0x68] sm:$0xff]  ;;  %v856_v12 = vld [vmem:[%s1569_s21 + $0x58] sm:$0xff]  ;;  %v840_v14 = vld [vmem:[%s1578_s10 + $0x60] sm:$0xff]  ;;  %s1815_s30 = smov (!%p783_p8, %s782_s30), 3  ;;  %p776_p9 = scmp.lt.s32.totalorder %s775_s20, 3 }
  0x23   : > { %920 = vmatpush.msra.mxu2 %v915_v4  ;;  %v855_v15 = vld [vmem:[%s1569_s21 + $0x50] sm:$0xff]  ;;  %v911_v16 = vld [vmem:[%s1562_s17 + $0x48] sm:$0xff]  ;;  %v839_v17 = vld [vmem:[%s1578_s10 + $0x58] sm:$0xff]  ;;  %s1613_s28 = sshll.u32 %s738_s27, 3 }
  0x24   : > { %863 = vmatpush.msra.mxu0 %v858_v5  ;;  %882 = vmatpush.msra.mxu1 %v842_v8  ;;  %v854_v18 = vld [vmem:[%s1569_s21 + $0x48] sm:$0xff]  ;;  %v910_v19 = vld [vmem:[%s1562_s17 + $0x40] sm:$0xff]  ;;  %v838_v20 = vld [vmem:[%s1578_s10 + $0x50] sm:$0xff]  ;;  %s748_s0 = scalar_lea.vmem %s1788_s3, %s1613_s28  ;;  %s744_s22 = scalar_lea.vmem %s1787_s2, %s1613_s28 }
  0x25   : > { %921 = vmatpush.msra.mxu2 %v914_v6  ;;  %v853_v21 = vld [vmem:[%s1569_s21 + $0x40] sm:$0xff]  ;;  %v909_v22 = vld [vmem:[%s1562_s17 + $0x38] sm:$0xff]  ;;  %v837_v23 = vld [vmem:[%s1578_s10 + $0x48] sm:$0xff]  ;;  %s740_s27 = scalar_lea.vmem %s1786_s1, %s1613_s28  ;;  %p771_p7 = scmp.lt.s32.totalorder %s770_s18, 3 }
  0x26   : > { %864 = vmatpush.msra.mxu0 %v857_v9  ;;  %883 = vmatpush.msra.mxu1 %v841_v11  ;;  %v852_v24 = vld [vmem:[%s1569_s21 + $0x38] sm:$0xff]  ;;  %v908_v25 = vld [vmem:[%s1562_s17 + $0x30] sm:$0xff]  ;;  %v836_v26 = vld [vmem:[%s1578_s10 + $0x40] sm:$0xff]  ;;  %s1817_s20 = smov (!%p776_p9, %s775_s20), 3 }
  0x27   : > { %922 = vmatpush.msra.mxu2 %v913_v10  ;;  %v851_v27 = vld [vmem:[%s1569_s21 + $0x30] sm:$0xff]  ;;  %v907_v28 = vld [vmem:[%s1562_s17 + $0x28] sm:$0xff]  ;;  %v835_v29 = vld [vmem:[%s1578_s10 + $0x38] sm:$0xff]  ;;  %s1813_s18 = smov (!%p771_p7, %s770_s18), 3 }
  0x28   : > { %865 = vmatpush.msra.mxu0 %v856_v12  ;;  %884 = vmatpush.msra.mxu1 %v840_v14  ;;  %v850_v30 = vld [vmem:[%s1569_s21 + $0x28] sm:$0xff]  ;;  %v906_v31 = vld [vmem:[%s1562_s17 + $0x20] sm:$0xff]  ;;  %v834_v32 = vld [vmem:[%s1578_s10 + $0x30] sm:$0xff]  ;;  %s773_s29 = scalar_lea.vmem %s1792_s7, %s1813_s18  ;;  %s794_s18 = sld [smem:[#allocation3 + %s1552_s26]] }
  0x29   : > { %923 = vmatpush.msra.mxu2 %v912_v13  ;;  %v849_v33 = vld [vmem:[%s1569_s21 + $0x20] sm:$0xff]  ;;  %v905_v34 = vld [vmem:[%s1562_s17 + $0x18] sm:$0xff]  ;;  %v833_v35 = vld [vmem:[%s1578_s10 + $0x28] sm:$0xff] }
  0x2a   : > { %866 = vmatpush.msra.mxu0 %v855_v15  ;;  %885 = vmatpush.msra.mxu1 %v839_v17  ;;  %v848_v36 = vld [vmem:[%s1569_s21 + $0x18] sm:$0xff]  ;;  %v904_v37 = vld [vmem:[%s1562_s17 + $0x10] sm:$0xff]  ;;  %v832_v38 = vld [vmem:[%s1578_s10 + $0x20] sm:$0xff] }
  0x2b   : > { %924 = vmatpush.msra.mxu2 %v911_v16  ;;  %v847_v39 = vld [vmem:[%s1569_s21 + $0x10] sm:$0xff]  ;;  %v903_v40 = vld [vmem:[%s1562_s17 + $0x8] sm:$0xff]  ;;  %v831_v41 = vld [vmem:[%s1578_s10 + $0x18] sm:$0xff] }
  0x2c   : > { %867 = vmatpush.msra.mxu0 %v854_v18  ;;  %886 = vmatpush.msra.mxu1 %v838_v20  ;;  %v846_v42 = vld [vmem:[%s1569_s21 + $0x8] sm:$0xff]  ;;  %v902_v43 = vld [vmem:[%s1562_s17] sm:$0xff]  ;;  %v830_v44 = vld [vmem:[%s1578_s10 + $0x10] sm:$0xff] }
  0x2d   : > { %925 = vmatpush.msra.mxu2 %v910_v19  ;;  %v901_v45 = vld [vmem:[%s748_s0] sm:$0xff]  ;;  %v829_v47 = vld [vmem:[%s1578_s10 + $0x8] sm:$0xff]  ;;  %s826_s0 = scalar_lea.vmem %s1801_s16, %s1613_s28 }
  0x2e   : > { %868 = vmatpush.msra.mxu0 %v853_v21  ;;  %887 = vmatpush.msra.mxu1 %v837_v23  ;;  %v845_v46 = vld [vmem:[%s1569_s21] sm:$0xff]  ;;  %p795_p10 = scmp.lt.s32.totalorder %s794_s18, 3  ;;  %s811_s21 = sld [smem:[#allocation3 + %s1552_s26]] }
  0x2f   : > { %926 = vmatpush.msra.mxu2 %v909_v22  ;;  %v844_v48 = vld [vmem:[%s744_s22] sm:$0xff]  ;;  %s1405_s22 = sshll.u32 %s1817_s20, 7  ;;  %s787_s20 = sld [smem:[#allocation3 + %s1552_s26]] }
  0x30   : > { %869 = vmatpush.msra.mxu0 %v852_v24  ;;  %888 = vmatpush.msra.mxu1 %v836_v26  ;;  %v828_v49 = vld [vmem:[%s1578_s10] sm:$0xff]  ;;  %s785_s10 = scalar_lea.vmem %s1794_s9, %s1815_s30  ;;  %s1819_s18 = smov (!%p795_p10, %s794_s18), 3 }
  0x31   : > { %927 = vmatpush.msra.mxu2 %v908_v25  ;;  %v827_v50 = vld [vmem:[%s740_s27] sm:$0xff]  ;;  %s1656_s27 = scalar_lea.vmem %s1793_s8, %s1405_s22  ;;  %s797_s19 = scalar_lea.vmem %s1796_s11, %s1819_s18 }
  0x32   : > { %870 = vmatpush.msra.mxu0 %v851_v27  ;;  %889 = vmatpush.msra.mxu1 %v835_v29  ;;  %v979_v51 = vld [vmem:[%s1656_s27 + $0x78] sm:$0xff]  ;;  %v978_v52 = vld [vmem:[%s1656_s27 + $0x70] sm:$0xff]  ;;  %v977_v53 = vld [vmem:[%s1656_s27 + $0x68] sm:$0xff]  ;;  %s806_s30 = sld [smem:[#allocation3 + %s1552_s26]] }
  0x33   : > { %928 = vmatpush.msra.mxu2 %v907_v28  ;;  %984 = vmatpush.msra.mxu3 %v979_v51  ;;  %v976_v54 = vld [vmem:[%s1656_s27 + $0x60] sm:$0xff]  ;;  %v975_v55 = vld [vmem:[%s1656_s27 + $0x58] sm:$0xff]  ;;  %v974_v56 = vld [vmem:[%s1656_s27 + $0x50] sm:$0xff]  ;;  %s818_s18 = sld [smem:[#allocation3 + %s1552_s26]] }
  0x34   : > { %871 = vmatpush.msra.mxu0 %v850_v30  ;;  %890 = vmatpush.msra.mxu1 %v834_v32  ;;  %v973_v57 = vld [vmem:[%s1656_s27 + $0x48] sm:$0xff]  ;;  %v972_v58 = vld [vmem:[%s1656_s27 + $0x40] sm:$0xff]  ;;  %v971_v59 = vld [vmem:[%s1656_s27 + $0x38] sm:$0xff]  ;;  %p812_p0 = scmp.lt.s32.totalorder %s811_s21, 3 }
  0x35   : > { %929 = vmatpush.msra.mxu2 %v906_v31  ;;  %985 = vmatpush.msra.mxu3 %v978_v52  ;;  %v970_v60 = vld [vmem:[%s1656_s27 + $0x30] sm:$0xff]  ;;  %v969_v61 = vld [vmem:[%s1656_s27 + $0x28] sm:$0xff]  ;;  %v968_v62 = vld [vmem:[%s1656_s27 + $0x20] sm:$0xff]  ;;  %p788_p11 = scmp.lt.s32.totalorder %s787_s20, 3 }
  0x36   : > { %872 = vmatpush.msra.mxu0 %v849_v33  ;;  %891 = vmatpush.msra.mxu1 %v833_v35  ;;  %v967_v63 = vld [vmem:[%s1656_s27 + $0x18] sm:$0xff]  ;;  %v966_v0 = vld [vmem:[%s1656_s27 + $0x10] sm:$0xff]  ;;  %v965_v2 = vld [vmem:[%s1656_s27 + $0x8] sm:$0xff]  ;;  %s1827_s21 = smov (!%p812_p0, %s811_s21), 3 }
  0x37   : > { %930 = vmatpush.msra.mxu2 %v905_v34  ;;  %986 = vmatpush.msra.mxu3 %v977_v53  ;;  %v1418_v6 = vld [vmem:[%s773_s29] ss:$0 sm:$0xff]  ;;  %s1821_s20 = smov (!%p788_p11, %s787_s20), 3  ;;  %s1408_s29 = sshll.u32 %s1827_s21, 7 }
  0x38   : > { %873 = vmatpush.msra.mxu0 %v848_v36  ;;  %892 = vmatpush.msra.mxu1 %v832_v38  ;;  %v964_v7 = vld [vmem:[%s1656_s27] sm:$0xff]  ;;  %s1406_s22 = sshll.u32 %s1821_s20, 7  ;;  %s1805_s27 = sld [smem:[#allocation6_spill]] }
  0x39   : > { %931 = vmatpush.msra.mxu2 %v904_v37  ;;  %987 = vmatpush.msra.mxu3 %v976_v54  ;;  %v1419_v38 = vld [vmem:[%s785_s10] ss:$0 sm:$0xff]  ;;  %p807_p12 = scmp.lt.s32.totalorder %s806_s30, 3  ;;  %s1750_s24 = scalar_lea.vmem %s1799_s14, %s1408_s29 }
  0x3a   : > { %874 = vmatpush.msra.mxu0 %v847_v39  ;;  %893 = vmatpush.msra.mxu1 %v831_v41  ;;  %p819_p1 = scmp.lt.s32.totalorder %s818_s18, 3 }
  0x3b   : > { %932 = vmatpush.msra.mxu2 %v903_v40  ;;  %988 = vmatpush.msra.mxu3 %v975_v55  ;;  %s1823_s30 = smov (!%p807_p12, %s806_s30), 3 }
  0x3c   : > { %875 = vmatpush.msra.mxu0 %v846_v42  ;;  %894 = vmatpush.msra.mxu1 %v830_v44  ;;  %s809_s20 = scalar_lea.vmem %s1798_s13, %s1823_s30  ;;  %s1829_s18 = smov (!%p819_p1, %s818_s18), 3 }
  0x3d   : > { %933 = vmatpush.msra.mxu2 %v902_v43  ;;  %989 = vmatpush.msra.mxu3 %v974_v56 }
  0x3e   : > { %934 = vmatmul.f32.vlgmr.msra.gmra.mxu2 %v901_v45  ;;  %876 = vmatpush.msra.mxu0 %v845_v46  ;;  %s1690_s17 = scalar_lea.vmem %s1805_s27, %s1406_s22  ;;  %s799_s22 = sld [smem:[#allocation3 + %s1552_s26]] }
  0x3f   : > { %895 = vmatpush.msra.mxu1 %v829_v47  ;;  %877 = vmatmul.f32.vlgmr.msra.gmra.mxu0 %v844_v48  ;;  %v1039_v24 = vld [vmem:[%s1690_s17 + $0x78] sm:$0xff]  ;;  %v1038_v25 = vld [vmem:[%s1690_s17 + $0x70] sm:$0xff]  ;;  %v1037_v26 = vld [vmem:[%s1690_s17 + $0x68] sm:$0xff] }
  0x40   : > { %990 = vmatpush.msra.mxu3 %v973_v57  ;;  %1044 = vmatpush.msrb.mxu0 %v1039_v24  ;;  %v1036_v27 = vld [vmem:[%s1690_s17 + $0x60] sm:$0xff]  ;;  %v1035_v28 = vld [vmem:[%s1690_s17 + $0x58] sm:$0xff]  ;;  %v1034_v29 = vld [vmem:[%s1690_s17 + $0x50] sm:$0xff] }
  0x41   : > { %896 = vmatpush.msra.mxu1 %v828_v49  ;;  %v1033_v30 = vld [vmem:[%s1690_s17 + $0x48] sm:$0xff]  ;;  %v1032_v31 = vld [vmem:[%s1690_s17 + $0x40] sm:$0xff]  ;;  %v1031_v32 = vld [vmem:[%s1690_s17 + $0x38] sm:$0xff] }
  0x42   : > { %897 = vmatmul.f32.vlgmr.msra.gmra.mxu1 %v827_v50  ;;  %991 = vmatpush.msra.mxu3 %v972_v58  ;;  %v1030_v33 = vld [vmem:[%s1690_s17 + $0x30] sm:$0xff]  ;;  %v1029_v34 = vld [vmem:[%s1690_s17 + $0x28] sm:$0xff]  ;;  %v1028_v35 = vld [vmem:[%s1690_s17 + $0x20] sm:$0xff] }
  0x43   : > { %1045 = vmatpush.msrb.mxu0 %v1038_v25  ;;  %v1027_v36 = vld [vmem:[%s1690_s17 + $0x18] sm:$0xff]  ;;  %v1026_v37 = vld [vmem:[%s1690_s17 + $0x10] sm:$0xff]  ;;  %v1025_v39 = vld [vmem:[%s1690_s17 + $0x8] sm:$0xff] }
  0x44   : > { %992 = vmatpush.msra.mxu3 %v971_v59  ;;  %v1024_v40 = vld [vmem:[%s1690_s17] sm:$0xff]  ;;  %p800_p13 = scmp.lt.s32.totalorder %s799_s22, 3  ;;  %v1133_v24 = vld [vmem:[%s1750_s24 + $0x30] sm:$0xff]  ;;  %v1132_v25 = vld [vmem:[%s1750_s24 + $0x28] sm:$0xff] }
  0x45   : > { %1046 = vmatpush.msrb.mxu0 %v1037_v26 }
  0x46   : > { %993 = vmatpush.msra.mxu3 %v970_v60  ;;  %s1825_s22 = smov (!%p800_p13, %s799_s22), 3 }
  0x47   : > { %1047 = vmatpush.msrb.mxu0 %v1036_v27  ;;  %s1407_s23 = sshll.u32 %s1825_s22, 7 }
  0x48   : > { %994 = vmatpush.msra.mxu3 %v969_v61  ;;  %s1724_s17 = scalar_lea.vmem %s1797_s12, %s1407_s23 }
  0x49   : > { %1048 = vmatpush.msrb.mxu0 %v1035_v28  ;;  %v1099_v57 = vld [vmem:[%s1724_s17 + $0x78] sm:$0xff]  ;;  %v1098_v58 = vld [vmem:[%s1724_s17 + $0x70] sm:$0xff]  ;;  %v1097_v59 = vld [vmem:[%s1724_s17 + $0x68] sm:$0xff] }
  0x4a   : > { %995 = vmatpush.msra.mxu3 %v968_v62  ;;  %1104 = vmatpush.msrb.mxu1 %v1099_v57  ;;  %v1096_v60 = vld [vmem:[%s1724_s17 + $0x60] sm:$0xff]  ;;  %v1095_v61 = vld [vmem:[%s1724_s17 + $0x58] sm:$0xff]  ;;  %v1094_v62 = vld [vmem:[%s1724_s17 + $0x50] sm:$0xff] }
  0x4b   : > { %1049 = vmatpush.msrb.mxu0 %v1034_v29  ;;  %v1131_v28 = vld [vmem:[%s1750_s24 + $0x20] sm:$0xff] }
  0x4c   : > { %996 = vmatpush.msra.mxu3 %v967_v63  ;;  %1105 = vmatpush.msrb.mxu1 %v1098_v58  ;;  %v1093_v63 = vld [vmem:[%s1724_s17 + $0x48] sm:$0xff] }
  0x4d   : > { %1050 = vmatpush.msrb.mxu0 %v1033_v30  ;;  %v1130_v30 = vld [vmem:[%s1750_s24 + $0x18] sm:$0xff] }
  0x4e   : > { %997 = vmatpush.msra.mxu3 %v966_v0  ;;  %1106 = vmatpush.msrb.mxu1 %v1097_v59  ;;  %v1092_v0 = vld [vmem:[%s1724_s17 + $0x40] sm:$0xff] }
  0x4f   : > { %1051 = vmatpush.msrb.mxu0 %v1032_v31 }
  0x50   : > { %998 = vmatpush.msra.mxu3 %v965_v2  ;;  %1107 = vmatpush.msrb.mxu1 %v1096_v60  ;;  %v1090_v2 = vld [vmem:[%s1724_s17 + $0x30] sm:$0xff] }
  0x51   : > { %1052 = vmatpush.msrb.mxu0 %v1031_v32 }
  0x52   : > { %999 = vmatpush.msra.mxu3 %v964_v7  ;;  %1108 = vmatpush.msrb.mxu1 %v1095_v61  ;;  %v1420_v7 = vld [vmem:[%s797_s19] ss:$0 sm:$0xff] }
  0x53   : > { %1053 = vmatpush.msrb.mxu0 %v1030_v33 }
  0x54   : > { %1109 = vmatpush.msrb.mxu1 %v1094_v62 }
  0x55   : > { %1054 = vmatpush.msrb.mxu0 %v1029_v34 }
  0x56   : > { %1110 = vmatpush.msrb.mxu1 %v1093_v63 }
  0x57   : > { %1055 = vmatpush.msrb.mxu0 %v1028_v35 }
  0x58   : > { %1111 = vmatpush.msrb.mxu1 %v1092_v0 }
  0x59   : > { %1056 = vmatpush.msrb.mxu0 %v1027_v36 }
  0x5b   : > { %1057 = vmatpush.msrb.mxu0 %v1026_v37 }
  0x5d   : > { %1058 = vmatpush.msrb.mxu0 %v1025_v39  ;;  %v1129_v39 = vld [vmem:[%s1750_s24 + $0x10] sm:$0xff] }
  0x5f   : > { %1059 = vmatpush.msrb.mxu0 %v1024_v40  ;;  %v1128_v40 = vld [vmem:[%s1750_s24 + $0x8] sm:$0xff] }
  0xbc   : > { %v878_v1 = vpop.f32.mrf.mxu0 }
  0xbf   : > { %v898_v3 = vpop.f32.mrf.mxu1 }
  0xc0   : > { %v899_v4 = vadd.f32 %v898_v3, %v878_v1  ;;  %v1091_v1 = vld [vmem:[%s1724_s17 + $0x38] sm:$0xff]  ;;  %v1089_v3 = vld [vmem:[%s1724_s17 + $0x28] sm:$0xff] }
  0xc1   : > { %v935_v5 = vpop.f32.mrf.mxu2  ;;  %1112 = vmatpush.msrb.mxu1 %v1091_v1 }
  0xc2   : > { %v938_v8 = vadd.f32 %v935_v5, %v899_v4  ;;  %v1088_v4 = vld [vmem:[%s1724_s17 + $0x20] sm:$0xff]  ;;  %v1087_v5 = vld [vmem:[%s1724_s17 + $0x18] sm:$0xff] }
  0xc3   : > { %1113 = vmatpush.msrb.mxu1 %v1090_v2 }
  0xc4   : > { %v943_v9 = vadd.f32 %v1418_v6, %v938_v8  ;;  %v1086_v6 = vld [vmem:[%s1724_s17 + $0x10] sm:$0xff]  ;;  %v1085_v8 = vld [vmem:[%s1724_s17 + $0x8] sm:$0xff] }
  0xc5   : > { %1114 = vmatpush.msrb.mxu1 %v1089_v3 }
  0xc6   : > { %v1397_v10 = vmul.f32 -1.442695, %v943_v9 }
  0xc7   : > { %1115 = vmatpush.msrb.mxu1 %v1088_v4 }
  0xc8   : > { %1423 = vpow2.f32 %v1397_v10 }
  0xc9   : > { %1116 = vmatpush.msrb.mxu1 %v1087_v5 }
  0xcb   : > { %1117 = vmatpush.msrb.mxu1 %v1086_v6 }
  0xcd   : > { %1118 = vmatpush.msrb.mxu1 %v1085_v8 }
  0xce   : > { %v1424_v11 = vpop.eup %1423 }
  0xcf   : > { %v947_v12 = vadd.f32 1.0, %v1424_v11 }
  0xd1   : > { %1425 = vrcp.f32 %v947_v12  ;;  %v959_v16 = vand.u32 2147483648, %v947_v12  ;;  %v957_v18 = vand.u32 2147483647, %v947_v12  ;;  %vm953_vm1 = vweird.f32 %v947_v12 }
  0xd3   : > { %v960_v20 = vor.u32 1.1754944e-38, %v959_v16  ;;  %vm958_vm3 = vcmp.eq.f32.partialorder %v957_v18, 8.507059e+37  ;;  %v1139_v16 = vld [vmem:[%s1750_s24 + $0x60] sm:$0xff]  ;;  %v1137_v18 = vld [vmem:[%s1750_s24 + $0x50] sm:$0xff] }
  0xd7   : > { %v1426_v13 = vpop.eup %1425 }
  0xd8   : > { %v949_v14 = vmul.f32 %v1426_v13, %v947_v12  ;;  %vm954_vm0 = vweird.f32 %v1426_v13  ;;  %v1142_v12 = vld [vmem:[%s1750_s24 + $0x78] sm:$0xff] }
  0xd9   : > { %vm955_vm2 = vmor %vm953_vm1, %vm954_vm0  ;;  %1147 = vmatpush.msrb.mxu2 %v1142_v12 }
  0xda   : > { %v950_v15 = vsub.f32 1.0, %v949_v14 }
  0xdc   : > { %v951_v17 = vmul.f32 %v1426_v13, %v950_v15  ;;  %v1140_v15 = vld [vmem:[%s1750_s24 + $0x68] sm:$0xff] }
  0xde   : > { %v952_v19 = vadd.f32 %v1426_v13, %v951_v17  ;;  %v1138_v17 = vld [vmem:[%s1750_s24 + $0x58] sm:$0xff] }
  0xe0   : > { %v956_v21 = vsel %vm955_vm2, %v1426_v13, %v952_v19  ;;  %v1141_v13 = vld [vmem:[%s1750_s24 + $0x70] sm:$0xff] }
  0xe1   : > { %v961_v22 = vsel %vm958_vm3, %v960_v20, %v956_v21  ;;  %1148 = vmatpush.msrb.mxu2 %v1141_v13  ;;  %v1136_v20 = vld [vmem:[%s1750_s24 + $0x48] sm:$0xff] }
  0xe2   : > { %v963_v23 = vmul.f32 %v961_v22, %v943_v9  ;;  %v1084_v9 = vld [vmem:[%s1724_s17] sm:$0xff]  ;;  %s821_s17 = scalar_lea.vmem %s1800_s15, %s1829_s18 }
  0xe3   : > { %1119 = vmatpush.msrb.mxu1 %v1084_v9  ;;  %1149 = vmatpush.msrb.mxu2 %v1140_v15  ;;  %v1135_v22 = vld [vmem:[%s1750_s24 + $0x40] sm:$0xff] }
  0xe4   : > { %1000 = vmatmul.f32.vlgmr.msra.gmra.mxu3 %v963_v23  ;;  %v1134_v23 = vld [vmem:[%s1750_s24 + $0x38] sm:$0xff] }
  0xe5   : > { %1150 = vmatpush.msrb.mxu2 %v1139_v16 }
  0xe7   : > { %1151 = vmatpush.msrb.mxu2 %v1138_v17 }
  0xe9   : > { %1152 = vmatpush.msrb.mxu2 %v1137_v18 }
  0xeb   : > { %1153 = vmatpush.msrb.mxu2 %v1136_v20 }
  0xed   : > { %1154 = vmatpush.msrb.mxu2 %v1135_v22 }
  0xef   : > { %1155 = vmatpush.msrb.mxu2 %v1134_v23 }
  0xf1   : > { %1156 = vmatpush.msrb.mxu2 %v1133_v24 }
  0xf3   : > { %1157 = vmatpush.msrb.mxu2 %v1132_v25 }
  0xf5   : > { %1158 = vmatpush.msrb.mxu2 %v1131_v28 }
  0xf7   : > { %1159 = vmatpush.msrb.mxu2 %v1130_v30 }
  0xf9   : > { %1160 = vmatpush.msrb.mxu2 %v1129_v39 }
  0xfb   : > { %1161 = vmatpush.msrb.mxu2 %v1128_v40 }
 0x167   : > { %v1001_v41 = vpop.f32.mrf.mxu3 }
 0x168   : > { %v1002_v42 = vadd.f32 %v1419_v38, %v1001_v41  ;;  %v1127_v41 = vld [vmem:[%s1750_s24] sm:$0xff] }
 0x169   : > { %1162 = vmatpush.msrb.mxu2 %v1127_v41 }
 0x16a   : > { %v1398_v43 = vmul.f32 -1.442695, %v1002_v42 }
 0x16c   : > { %1427 = vpow2.f32 %v1398_v43 }
 0x172   : > { %v1428_v44 = vpop.eup %1427 }
 0x173   : > { %v1007_v45 = vadd.f32 1.0, %v1428_v44 }
 0x175   : > { %1429 = vrcp.f32 %v1007_v45  ;;  %v1019_v49 = vand.u32 2147483648, %v1007_v45  ;;  %v1017_v51 = vand.u32 2147483647, %v1007_v45  ;;  %vm1013_vm5 = vweird.f32 %v1007_v45 }
 0x177   : > { %v1020_v53 = vor.u32 1.1754944e-38, %v1019_v49  ;;  %vm1018_vm7 = vcmp.eq.f32.partialorder %v1017_v51, 8.507059e+37 }
 0x17b   : > { %v1430_v46 = vpop.eup %1429 }
 0x17c   : > { %v1009_v47 = vmul.f32 %v1430_v46, %v1007_v45  ;;  %vm1014_vm4 = vweird.f32 %v1430_v46 }
 0x17d   : > { %vm1015_vm6 = vmor %vm1013_vm5, %vm1014_vm4 }
 0x17e   : > { %v1010_v48 = vsub.f32 1.0, %v1009_v47  ;;  %v1422_v47 = vld [vmem:[%s821_s17] ss:$0 sm:$0xff] }
 0x180   : > { %v1011_v50 = vmul.f32 %v1430_v46, %v1010_v48 }
 0x182   : > { %v1012_v52 = vadd.f32 %v1430_v46, %v1011_v50 }
 0x184   : > { %v1016_v54 = vsel %vm1015_vm6, %v1430_v46, %v1012_v52 }
 0x185   : > { %v1021_v55 = vsel %vm1018_vm7, %v1020_v53, %v1016_v54 }
 0x186   : > { %v1023_v56 = vmul.f32 %v1021_v55, %v1002_v42  ;;  %v1421_v42 = vld [vmem:[%s809_s20] ss:$0 sm:$0xff] }
 0x188   : > { %1060 = vmatmul.f32.vlgmr.msrb.gmra.mxu0 %v1023_v56 }
 0x205   : > { %v1061_v10 = vpop.f32.mrf.mxu0 }
 0x206   : > { %v1062_v11 = vadd.f32 %v1420_v7, %v1061_v10 }
 0x208   : > { %v1399_v14 = vmul.f32 -1.442695, %v1062_v11 }
 0x20a   : > { %1431 = vpow2.f32 %v1399_v14 }
 0x210   : > { %v1432_v19 = vpop.eup %1431 }
 0x211   : > { %v1067_v21 = vadd.f32 1.0, %v1432_v19 }
 0x213   : > { %1433 = vrcp.f32 %v1067_v21  ;;  %v1079_v31 = vand.u32 2147483648, %v1067_v21  ;;  %v1077_v33 = vand.u32 2147483647, %v1067_v21  ;;  %vm1073_vm9 = vweird.f32 %v1067_v21 }
 0x215   : > { %v1080_v35 = vor.u32 1.1754944e-38, %v1079_v31  ;;  %vm1078_vm11 = vcmp.eq.f32.partialorder %v1077_v33, 8.507059e+37 }
 0x219   : > { %v1434_v26 = vpop.eup %1433 }
 0x21a   : > { %v1069_v27 = vmul.f32 %v1434_v26, %v1067_v21  ;;  %vm1074_vm8 = vweird.f32 %v1434_v26 }
 0x21b   : > { %vm1075_vm10 = vmor %vm1073_vm9, %vm1074_vm8 }
 0x21c   : > { %v1070_v29 = vsub.f32 1.0, %v1069_v27 }
 0x21e   : > { %v1071_v32 = vmul.f32 %v1434_v26, %v1070_v29 }
 0x220   : > { %v1072_v34 = vadd.f32 %v1434_v26, %v1071_v32 }
 0x222   : > { %v1076_v36 = vsel %vm1075_vm10, %v1434_v26, %v1072_v34 }
 0x223   : > { %v1081_v37 = vsel %vm1078_vm11, %v1080_v35, %v1076_v36 }
 0x224   : > { %v1083_v38 = vmul.f32 %v1081_v37, %v1062_v11 }
 0x226   : > { %1120 = vmatmul.f32.vlgmr.msrb.gmra.mxu1 %v1083_v38 }
 0x2a3   : > { %v1121_v43 = vpop.f32.mrf.mxu1 }
 0x2a4   : > { %v1122_v44 = vadd.f32 %v1421_v42, %v1121_v43 }
 0x2a6   : > { %v1125_v45 = vmul.f32 0.01, %v1122_v44  ;;  %vm1124_vm12 = vcmp.ge.f32.partialorder %v1122_v44, 0.0 }
 0x2a8   : > { %v1126_v46 = vsel %vm1124_vm12, %v1122_v44, %v1125_v45 }
 0x2a9   : > { %1163 = vmatmul.f32.vlgmr.msrb.gmra.mxu2 %v1126_v46 }
 0x32c   : > { %v1164_v48 = vpop.f32.mrf.mxu2 }
 0x32d   : > { %v1165_v49 = vadd.f32 %v1422_v47, %v1164_v48 }
 0x32f   : > { %1167 = vst [vmem:[%s826_s0] sm:$0xff] %v1165_v49 }
 0x330 PF: > { %s34_s25 = sadd.s32 1, %s1455_s25  }
 0x331   : > { %p31_p2 = scmp.ge.s32.totalorder %s34_s25, 8  }
 0x333   :  { %33 = sbr.rel (!%p31_p2) target bundleno = 15 (0xf), region = 152 }

</bundles_post_ra>
